<compile_context>
chip_gen: v7x
topology: tpu7x:2x2x1
jax: 0.10.0
libtpu: 0.0.40
codegen_flags: <defaults>
</compile_context>

<pallas_src>
import functools

import jax
import jax.numpy as jnp
from jax import lax
from jax.experimental import pallas as pl
from jax.experimental.pallas import tpu as pltpu

# Small, TPU-friendly shapes consistent with the module's forward
# (original: EMBED_SIZE=510, BLOCK_SIZE=128; here scaled down, same structure).
EMBED_SIZE = 128                     # embedding dim E (last / lane dim)
NUM_HEADS = 4                        # `head_size` arg to Block == number of heads
HEAD_DIM = EMBED_SIZE // NUM_HEADS   # per-head dim (h_size in the PyTorch code)
SEQ_LEN = 16                         # T (<= BLOCK_SIZE, causal mask tril[:T,:T])
BATCH = 8
BATCH_PER_STEP = 2                   # batch rows folded into M per grid step
FFN_HIDDEN = 4 * EMBED_SIZE
LN_EPS = 1e-5


def _layernorm(v, gamma, beta):
    mu = jnp.mean(v, axis=-1, keepdims=True)
    var = jnp.mean((v - mu) ** 2, axis=-1, keepdims=True)
    return (v - mu) * lax.rsqrt(var + LN_EPS) * gamma + beta


def block_kernel(x_ref,
                 ln1g_ref, ln1b_ref,
                 wqkv_ref,
                 wproj_ref, bproj_ref,
                 ln2g_ref, ln2b_ref,
                 w1_ref, b1_ref, w2_ref, b2_ref,
                 out_ref,
                 qkv_scr, ho_scr,
                 *, seq_len, num_heads):
    # x_ref block: (M, E) with M = BATCH_PER_STEP * T (batch folded into matmul rows).
    M, E = x_ref.shape
    T = seq_len
    BB = M // T
    H = num_heads
    hd = E // H

    # ---- LayerNorm 1 (f32) ----
    x1 = _layernorm(x_ref[...], ln1g_ref[...], ln1b_ref[...])

    # ---- fused QKV projection: one lane-dense (M,E)@(E,3E) MXU matmul ----
    qkv = jnp.dot(x1.astype(jnp.bfloat16), wqkv_ref[...],
                  preferred_element_type=jnp.float32)                 # (M, 3E) f32
    # Single bf16 cast; parked in VMEM scratch so the slab is re-sliced from the
    # ref inside the head loops instead of being held live in vregs.
    qkv_scr[...] = qkv.astype(jnp.bfloat16)

    # NOTE: PyTorch code scales by C**(-0.5) where C is the *embed* dim, not head dim.
    scale = jnp.float32(float(E) ** (-0.5))

    # Additive causal mask, built once per kernel invocation (hoisted out of all loops).
    row = lax.broadcasted_iota(jnp.int32, (T, T), 0)
    col = lax.broadcasted_iota(jnp.int32, (T, T), 1)
    mask_add = jnp.where(col <= row, 0.0, -1e30).astype(jnp.float32)  # (T, T)

    # ---- multi-head causal self-attention ----
    # Each head writes its (T, hd) output into its lane slot of ho_scr; the output
    # projection then runs as ONE full-K (M,E)@(E,E) matmul (no per-head K=hd
    # matmuls, no accumulator adds, no axis-0 concatenate).
    for b in range(BB):                     # static loop over folded batch rows
        r0 = b * T
        for h in range(H):                  # static loop over heads
            c0 = h * hd
            qh = qkv_scr[r0:r0 + T, 0 * E + c0:0 * E + c0 + hd]
            kh = qkv_scr[r0:r0 + T, 1 * E + c0:1 * E + c0 + hd]
            vh = qkv_scr[r0:r0 + T, 2 * E + c0:2 * E + c0 + hd]
            # q @ k^T without an explicit transpose: contract the last dims.
            s = lax.dot_general(qh, kh, (((1,), (1,)), ((), ())),
                                preferred_element_type=jnp.float32)   # (T, T)
            s = s * scale + mask_add
            s = s - jnp.max(s, axis=-1, keepdims=True)
            p = jnp.exp(s)
            p = p * pl.reciprocal(jnp.sum(p, axis=-1, keepdims=True), approx=True)
            # TODO(synk): attention dropout (p=0.2) omitted — eval-mode identity.
            oh = jnp.dot(p.astype(jnp.bfloat16), vh,
                         preferred_element_type=jnp.float32)          # (T, hd)
            ho_scr[r0:r0 + T, c0:c0 + hd] = oh.astype(jnp.bfloat16)

    # concat(heads) @ Wproj as a single full-K matmul over the scratch slab.
    sa = jnp.dot(ho_scr[...], wproj_ref[...],
                 preferred_element_type=jnp.float32) + bproj_ref[...]
    # TODO(synk): projection dropout (p=0.2) omitted — eval-mode identity.

    x2 = x_ref[...] + sa                     # first residual (re-read x at use time)

    # ---- LayerNorm 2 + FFN ----
    x2n = _layernorm(x2, ln2g_ref[...], ln2b_ref[...]).astype(jnp.bfloat16)
    hid = jnp.dot(x2n, w1_ref[...], preferred_element_type=jnp.float32) + b1_ref[...]
    hid = jnp.maximum(hid, 0.0).astype(jnp.bfloat16)      # ReLU
    ff = jnp.dot(hid, w2_ref[...], preferred_element_type=jnp.float32) + b2_ref[...]
    # TODO(synk): FFN dropout (p=0.2) omitted — eval-mode identity.

    out_ref[...] = (x2 + ff).astype(out_ref.dtype)


def transformer_block(x, params, *, batch_per_step=BATCH_PER_STEP):
    B, T, E = x.shape
    BB = min(batch_per_step, B)
    assert B % BB == 0
    assert E == EMBED_SIZE
    M = BB * T                                  # rows per grid step
    R = B * T                                   # total rows

    # Fold batch into the matmul M dimension; kernel sees lane-dense (M, E) slabs.
    x2d = x.reshape(R, E)

    def const_spec(shape, single_buffer=False):
        idx = lambda i: (0,) * len(shape)
        if single_buffer:
            # Constant across the grid -> one VMEM buffer suffices (saves ~half
            # the weight VMEM footprint vs default double-buffering; matters on
            # v7x's 64 MiB VMEM at production sizes).
            return pl.BlockSpec(shape, idx, pipeline_mode=pl.Buffered(1))
        return pl.BlockSpec(shape, idx)

    grid_spec = pltpu.PrefetchScalarGridSpec(
        num_scalar_prefetch=0,
        grid=(B // BB,),                        # 4 parallel steps -> >=2 per v7x core
        in_specs=[
            pl.BlockSpec((M, E), lambda i: (i, 0)),               # x rows this step
            const_spec((1, E)), const_spec((1, E)),               # ln1 gamma/beta (f32)
            const_spec((E, 3 * E), single_buffer=True),           # fused QKV W (bf16)
            const_spec((E, E), single_buffer=True),               # proj W (bf16)
            const_spec((1, E)),                                   # proj b (f32)
            const_spec((1, E)), const_spec((1, E)),               # ln2 gamma/beta (f32)
            const_spec((E, FFN_HIDDEN), single_buffer=True),      # ffn W1 (bf16)
            const_spec((1, FFN_HIDDEN)),                          # ffn b1 (f32)
            const_spec((FFN_HIDDEN, E), single_buffer=True),      # ffn W2 (bf16)
            const_spec((1, E)),                                   # ffn b2 (f32)
        ],
        out_specs=pl.BlockSpec((M, E), lambda i: (i, 0)),
        scratch_shapes=[
            pltpu.VMEM((M, 3 * E), jnp.bfloat16),   # bf16 QKV activations
            pltpu.VMEM((M, E), jnp.bfloat16),       # concat(head outputs)
        ],
    )

    kernel = functools.partial(block_kernel, seq_len=T, num_heads=NUM_HEADS)

    out2d = pl.pallas_call(
        kernel,
        out_shape=jax.ShapeDtypeStruct((R, E), x.dtype),
        grid_spec=grid_spec,
        compiler_params=pltpu.CompilerParams(
            dimension_semantics=("parallel",),
            vmem_limit_bytes=32 * 1024 * 1024,   # explicit; safe on v5e/v6e/v7x
        ),
    )(
        x2d,
        params["ln1_g"], params["ln1_b"],
        params["wqkv"],
        params["wproj"], params["bproj"],
        params["ln2_g"], params["ln2_b"],
        params["w1"], params["b1"], params["w2"], params["b2"],
    )
    return out2d.reshape(B, T, E)


def init_params(key):
    ks = jax.random.split(key, 9)
    s = 0.02
    E, F = EMBED_SIZE, FFN_HIDDEN
    f32, bf16 = jnp.float32, jnp.bfloat16
    wq = s * jax.random.normal(ks[0], (E, E), f32)
    wk = s * jax.random.normal(ks[1], (E, E), f32)
    wv = s * jax.random.normal(ks[2], (E, E), f32)
    return {
        "ln1_g": jnp.ones((1, E), f32),
        "ln1_b": jnp.zeros((1, E), f32),
        # fused (E, 3E) QKV weight; bf16 storage halves DMA bytes / VMEM footprint.
        "wqkv": jnp.concatenate([wq, wk, wv], axis=1).astype(bf16),
        "wproj": (s * jax.random.normal(ks[3], (E, E), f32)).astype(bf16),
        "bproj": s * jax.random.normal(ks[4], (1, E), f32),
        "ln2_g": jnp.ones((1, E), f32),
        "ln2_b": jnp.zeros((1, E), f32),
        "w1": (s * jax.random.normal(ks[5], (E, F), f32)).astype(bf16),
        "b1": s * jax.random.normal(ks[6], (1, F), f32),
        "w2": (s * jax.random.normal(ks[7], (F, E), f32)).astype(bf16),
        "b2": s * jax.random.normal(ks[8], (1, E), f32),
    }


def reference_block(x, p):
    """Pure-JAX f32 reference of the PyTorch forward (eval mode)."""
    f32 = jnp.float32

    def ln(v, g, b):
        mu = v.mean(-1, keepdims=True)
        var = ((v - mu) ** 2).mean(-1, keepdims=True)
        return (v - mu) / jnp.sqrt(var + LN_EPS) * g + b

    B, T, E = x.shape
    hd = E // NUM_HEADS
    wqkv = p["wqkv"].astype(f32)
    wq, wk, wv = wqkv[:, :E], wqkv[:, E:2 * E], wqkv[:, 2 * E:]
    wproj = p["wproj"].astype(f32)
    w1 = p["w1"].astype(f32)
    w2 = p["w2"].astype(f32)

    x1 = ln(x, p["ln1_g"][0], p["ln1_b"][0])
    scale = E ** (-0.5)
    mask = jnp.tril(jnp.ones((T, T), bool))
    outs = []
    for h in range(NUM_HEADS):
        qh = x1 @ wq[:, h * hd:(h + 1) * hd]
        kh = x1 @ wk[:, h * hd:(h + 1) * hd]
        vh = x1 @ wv[:, h * hd:(h + 1) * hd]
        w = jnp.einsum("btd,bsd->bts", qh, kh) * scale
        w = jnp.where(mask, w, -jnp.inf)
        w = jax.nn.softmax(w, axis=-1)
        outs.append(w @ vh)
    sa = jnp.concatenate(outs, axis=-1) @ wproj + p["bproj"][0]
    x2 = x + sa
    x2n = ln(x2, p["ln2_g"][0], p["ln2_b"][0])
    ff = jnp.maximum(x2n @ w1 + p["b1"][0], 0.0) @ w2 + p["b2"][0]
    return x2 + ff


if __name__ == "__main__":
    key = jax.random.PRNGKey(0)
    kx, kp = jax.random.split(key)
    x = jax.random.normal(kx, (BATCH, SEQ_LEN, EMBED_SIZE), jnp.float32)
    params = init_params(kp)

    out = transformer_block(x, params)
    out = jax.block_until_ready(out)

    ref = reference_block(x, params)
    assert out.shape == (BATCH, SEQ_LEN, EMBED_SIZE)
    # Kernel casts matmul operands to bf16 (f32 accumulation); compare loosely vs f32 ref.
    max_err = float(jnp.max(jnp.abs(out - ref)))
    assert jnp.allclose(out, ref, atol=2e-2, rtol=2e-2), f"mismatch vs reference (max abs err {max_err})"

    print("KERNEL_OK")
</pallas_src>

<mosaic_0001>
module attributes {stable_mosaic.version = 11 : i64} {
  func.func @block_kernel(%arg0: i32, %arg1: memref<32x128xf32, #tpu.memory_space<vmem>>, %arg2: memref<1x128xf32, #tpu.memory_space<vmem>>, %arg3: memref<1x128xf32, #tpu.memory_space<vmem>>, %arg4: memref<128x384xbf16, #tpu.memory_space<vmem>>, %arg5: memref<128x128xbf16, #tpu.memory_space<vmem>>, %arg6: memref<1x128xf32, #tpu.memory_space<vmem>>, %arg7: memref<1x128xf32, #tpu.memory_space<vmem>>, %arg8: memref<1x128xf32, #tpu.memory_space<vmem>>, %arg9: memref<128x512xbf16, #tpu.memory_space<vmem>>, %arg10: memref<1x512xf32, #tpu.memory_space<vmem>>, %arg11: memref<512x128xbf16, #tpu.memory_space<vmem>>, %arg12: memref<1x128xf32, #tpu.memory_space<vmem>>, %arg13: memref<32x128xf32, #tpu.memory_space<vmem>>, %arg14: memref<32x384xbf16, #tpu.memory_space<vmem>>, %arg15: memref<32x128xbf16, #tpu.memory_space<vmem>>) attributes {dimension_semantics = [#tpu.dimension_semantics<parallel>], iteration_bounds = array<i64: 4>, scalar_prefetch = 0 : i64, scratch_operands = 2 : i64, tpu.core_type = #tpu.core_type<tc>, window_params = [{transform_indices = @transform_0, window_bounds = array<i64: 32, 128>}, {pipeline_mode = #tpu.pipeline_mode<synchronous>, transform_indices = @transform_1, window_bounds = array<i64: 1, 128>}, {pipeline_mode = #tpu.pipeline_mode<synchronous>, transform_indices = @transform_2, window_bounds = array<i64: 1, 128>}, {pipeline_mode = #tpu.pipeline_mode<synchronous>, transform_indices = @transform_3, window_bounds = array<i64: 128, 384>}, {pipeline_mode = #tpu.pipeline_mode<synchronous>, transform_indices = @transform_4, window_bounds = array<i64: 128, 128>}, {pipeline_mode = #tpu.pipeline_mode<synchronous>, transform_indices = @transform_5, window_bounds = array<i64: 1, 128>}, {pipeline_mode = #tpu.pipeline_mode<synchronous>, transform_indices = @transform_6, window_bounds = array<i64: 1, 128>}, {pipeline_mode = #tpu.pipeline_mode<synchronous>, transform_indices = @transform_7, window_bounds = array<i64: 1, 128>}, {pipeline_mode = #tpu.pipeline_mode<synchronous>, transform_indices = @transform_8, window_bounds = array<i64: 128, 512>}, {pipeline_mode = #tpu.pipeline_mode<synchronous>, transform_indices = @transform_9, window_bounds = array<i64: 1, 512>}, {pipeline_mode = #tpu.pipeline_mode<synchronous>, transform_indices = @transform_10, window_bounds = array<i64: 512, 128>}, {pipeline_mode = #tpu.pipeline_mode<synchronous>, transform_indices = @transform_11, window_bounds = array<i64: 1, 128>}, {transform_indices = @transform_12, window_bounds = array<i64: 32, 128>}]} {
    %c0 = arith.constant 0 : index
    %c0_0 = arith.constant 0 : index
    %0 = vector.load %arg1[%c0, %c0_0] : memref<32x128xf32, #tpu.memory_space<vmem>>, vector<32x128xf32>
    %c0_1 = arith.constant 0 : index
    %c0_2 = arith.constant 0 : index
    %1 = vector.load %arg2[%c0_1, %c0_2] : memref<1x128xf32, #tpu.memory_space<vmem>>, vector<1x128xf32>
    %c0_3 = arith.constant 0 : index
    %c0_4 = arith.constant 0 : index
    %2 = vector.load %arg3[%c0_3, %c0_4] : memref<1x128xf32, #tpu.memory_space<vmem>>, vector<1x128xf32>
    %cst = arith.constant dense<0.000000e+00> : vector<32xf32>
    %3 = vector.multi_reduction <add>, %0, %cst [1] : vector<32x128xf32> to vector<32xf32>
    %4 = vector.shape_cast %3 : vector<32xf32> to vector<32x1xf32>
    %cst_5 = arith.constant 1.280000e+02 : f32
    %5 = vector.broadcast %cst_5 : f32 to vector<32x1xf32>
    %6 = arith.divf %4, %5 : vector<32x1xf32>
    %7 = vector.broadcast %6 : vector<32x1xf32> to vector<32x128xf32>
    %8 = arith.subf %0, %7 : vector<32x128xf32>
    %9 = arith.mulf %8, %8 : vector<32x128xf32>
    %cst_6 = arith.constant dense<0.000000e+00> : vector<32xf32>
    %10 = vector.multi_reduction <add>, %9, %cst_6 [1] : vector<32x128xf32> to vector<32xf32>
    %11 = vector.shape_cast %10 : vector<32xf32> to vector<32x1xf32>
    %cst_7 = arith.constant 1.280000e+02 : f32
    %12 = vector.broadcast %cst_7 : f32 to vector<32x1xf32>
    %13 = arith.divf %11, %12 : vector<32x1xf32>
    %14 = vector.broadcast %6 : vector<32x1xf32> to vector<32x128xf32>
    %15 = arith.subf %0, %14 : vector<32x128xf32>
    %cst_8 = arith.constant 9.99999974E-6 : f32
    %16 = vector.broadcast %cst_8 : f32 to vector<32x1xf32>
    %17 = arith.addf %13, %16 : vector<32x1xf32>
    %18 = math.rsqrt %17 : vector<32x1xf32>
    %19 = vector.broadcast %18 : vector<32x1xf32> to vector<32x128xf32>
    %20 = arith.mulf %15, %19 : vector<32x128xf32>
    %21 = vector.broadcast %1 : vector<1x128xf32> to vector<32x128xf32>
    %22 = arith.mulf %20, %21 : vector<32x128xf32>
    %23 = vector.broadcast %2 : vector<1x128xf32> to vector<32x128xf32>
    %24 = arith.addf %22, %23 : vector<32x128xf32>
    %25 = arith.truncf %24 : vector<32x128xf32> to vector<32x128xbf16>
    %c0_9 = arith.constant 0 : index
    %c0_10 = arith.constant 0 : index
    %26 = vector.load %arg4[%c0_9, %c0_10] : memref<128x384xbf16, #tpu.memory_space<vmem>>, vector<128x384xbf16>
    %cst_11 = arith.constant dense<0.000000e+00> : vector<32x384xf32>
    %27 = tpu.matmul %25, %26, %cst_11 {dimension_numbers = #tpu.dot_dimension_numbers<[1], [0], [0], [1], [0, 0, 1, 1], [], []>} : vector<32x128xbf16>, vector<128x384xbf16>, vector<32x384xf32> -> vector<32x384xf32>
    %28 = arith.truncf %27 : vector<32x384xf32> to vector<32x384xbf16>
    %c0_12 = arith.constant 0 : index
    %c0_13 = arith.constant 0 : index
    %29 = vector.load %arg14[%c0_12, %c0_13] : memref<32x384xbf16, #tpu.memory_space<vmem>>, vector<32x384xbf16>
    tpu.vector_store %arg14[%c0_12, %c0_13], %28 {strides = array<i32>} : memref<32x384xbf16, #tpu.memory_space<vmem>>, vector<32x384xbf16>,
    %30 = tpu.iota {dimensions = array<i32: 0>} : vector<16x16xi32>
    %31 = tpu.iota {dimensions = array<i32: 1>} : vector<16x16xi32>
    %32 = arith.cmpi sle, %31, %30 : vector<16x16xi32>
    %cst_14 = arith.constant 0.000000e+00 : f32
    %cst_15 = arith.constant -1.000000e+30 : f32
    %33 = vector.broadcast %cst_14 : f32 to vector<16x16xf32>
    %34 = vector.broadcast %cst_15 : f32 to vector<16x16xf32>
    %35 = arith.select %32, %33, %34 : vector<16x16xi1>, vector<16x16xf32>
    %c0_16 = arith.constant 0 : index
    %c0_17 = arith.constant 0 : index
    %36 = vector.load %arg14[%c0_16, %c0_17] : memref<32x384xbf16, #tpu.memory_space<vmem>>, vector<16x32xbf16>
    %c0_18 = arith.constant 0 : index
    %c128 = arith.constant 128 : index
    %37 = vector.load %arg14[%c0_18, %c128] : memref<32x384xbf16, #tpu.memory_space<vmem>>, vector<16x32xbf16>
    %c0_19 = arith.constant 0 : index
    %c256 = arith.constant 256 : index
    %38 = vector.load %arg14[%c0_19, %c256] : memref<32x384xbf16, #tpu.memory_space<vmem>>, vector<16x32xbf16>
    %cst_20 = arith.constant dense<0.000000e+00> : vector<16x16xf32>
    %39 = tpu.matmul %36, %37, %cst_20 {dimension_numbers = #tpu.dot_dimension_numbers<[1], [1], [0], [0], [0, 0, 1, 0], [], []>} : vector<16x32xbf16>, vector<16x32xbf16>, vector<16x16xf32> -> vector<16x16xf32>
    %cst_21 = arith.constant 0.0883883461 : f32
    %40 = vector.broadcast %cst_21 : f32 to vector<16x16xf32>
    %41 = arith.mulf %39, %40 : vector<16x16xf32>
    %42 = arith.addf %41, %35 : vector<16x16xf32>
    %cst_22 = arith.constant dense<0xFF800000> : vector<16xf32>
    %43 = vector.multi_reduction <maximumf>, %42, %cst_22 [1] : vector<16x16xf32> to vector<16xf32>
    %44 = vector.shape_cast %43 : vector<16xf32> to vector<16x1xf32>
    %45 = vector.broadcast %44 : vector<16x1xf32> to vector<16x16xf32>
    %46 = arith.subf %42, %45 : vector<16x16xf32>
    %47 = math.exp %46 : vector<16x16xf32>
    %cst_23 = arith.constant dense<0.000000e+00> : vector<16xf32>
    %48 = vector.multi_reduction <add>, %47, %cst_23 [1] : vector<16x16xf32> to vector<16xf32>
    %49 = vector.shape_cast %48 : vector<16xf32> to vector<16x1xf32>
    %50 = tpu.reciprocal %49 {approx = true} : vector<16x1xf32> -> vector<16x1xf32>
    %51 = vector.broadcast %50 : vector<16x1xf32> to vector<16x16xf32>
    %52 = arith.mulf %47, %51 : vector<16x16xf32>
    %53 = arith.truncf %52 : vector<16x16xf32> to vector<16x16xbf16>
    %cst_24 = arith.constant dense<0.000000e+00> : vector<16x32xf32>
    %54 = tpu.matmul %53, %38, %cst_24 {dimension_numbers = #tpu.dot_dimension_numbers<[1], [0], [0], [1], [0, 0, 1, 1], [], []>} : vector<16x16xbf16>, vector<16x32xbf16>, vector<16x32xf32> -> vector<16x32xf32>
    %55 = arith.truncf %54 : vector<16x32xf32> to vector<16x32xbf16>
    %c0_25 = arith.constant 0 : index
    %c0_26 = arith.constant 0 : index
    %56 = vector.load %arg15[%c0_25, %c0_26] : memref<32x128xbf16, #tpu.memory_space<vmem>>, vector<16x32xbf16>
    tpu.vector_store %arg15[%c0_25, %c0_26], %55 {strides = array<i32>} : memref<32x128xbf16, #tpu.memory_space<vmem>>, vector<16x32xbf16>,
    %c0_27 = arith.constant 0 : index
    %c32 = arith.constant 32 : index
    %57 = vector.load %arg14[%c0_27, %c32] : memref<32x384xbf16, #tpu.memory_space<vmem>>, vector<16x32xbf16>
    %c0_28 = arith.constant 0 : index
    %c160 = arith.constant 160 : index
    %58 = vector.load %arg14[%c0_28, %c160] : memref<32x384xbf16, #tpu.memory_space<vmem>>, vector<16x32xbf16>
    %c0_29 = arith.constant 0 : index
    %c288 = arith.constant 288 : index
    %59 = vector.load %arg14[%c0_29, %c288] : memref<32x384xbf16, #tpu.memory_space<vmem>>, vector<16x32xbf16>
    %cst_30 = arith.constant dense<0.000000e+00> : vector<16x16xf32>
    %60 = tpu.matmul %57, %58, %cst_30 {dimension_numbers = #tpu.dot_dimension_numbers<[1], [1], [0], [0], [0, 0, 1, 0], [], []>} : vector<16x32xbf16>, vector<16x32xbf16>, vector<16x16xf32> -> vector<16x16xf32>
    %cst_31 = arith.constant 0.0883883461 : f32
    %61 = vector.broadcast %cst_31 : f32 to vector<16x16xf32>
    %62 = arith.mulf %60, %61 : vector<16x16xf32>
    %63 = arith.addf %62, %35 : vector<16x16xf32>
    %cst_32 = arith.constant dense<0xFF800000> : vector<16xf32>
    %64 = vector.multi_reduction <maximumf>, %63, %cst_32 [1] : vector<16x16xf32> to vector<16xf32>
    %65 = vector.shape_cast %64 : vector<16xf32> to vector<16x1xf32>
    %66 = vector.broadcast %65 : vector<16x1xf32> to vector<16x16xf32>
    %67 = arith.subf %63, %66 : vector<16x16xf32>
    %68 = math.exp %67 : vector<16x16xf32>
    %cst_33 = arith.constant dense<0.000000e+00> : vector<16xf32>
    %69 = vector.multi_reduction <add>, %68, %cst_33 [1] : vector<16x16xf32> to vector<16xf32>
    %70 = vector.shape_cast %69 : vector<16xf32> to vector<16x1xf32>
    %71 = tpu.reciprocal %70 {approx = true} : vector<16x1xf32> -> vector<16x1xf32>
    %72 = vector.broadcast %71 : vector<16x1xf32> to vector<16x16xf32>
    %73 = arith.mulf %68, %72 : vector<16x16xf32>
    %74 = arith.truncf %73 : vector<16x16xf32> to vector<16x16xbf16>
    %cst_34 = arith.constant dense<0.000000e+00> : vector<16x32xf32>
    %75 = tpu.matmul %74, %59, %cst_34 {dimension_numbers = #tpu.dot_dimension_numbers<[1], [0], [0], [1], [0, 0, 1, 1], [], []>} : vector<16x16xbf16>, vector<16x32xbf16>, vector<16x32xf32> -> vector<16x32xf32>
    %76 = arith.truncf %75 : vector<16x32xf32> to vector<16x32xbf16>
    %c0_35 = arith.constant 0 : index
    %c32_36 = arith.constant 32 : index
    %77 = vector.load %arg15[%c0_35, %c32_36] : memref<32x128xbf16, #tpu.memory_space<vmem>>, vector<16x32xbf16>
    tpu.vector_store %arg15[%c0_35, %c32_36], %76 {strides = array<i32>} : memref<32x128xbf16, #tpu.memory_space<vmem>>, vector<16x32xbf16>,
    %c0_37 = arith.constant 0 : index
    %c64 = arith.constant 64 : index
    %78 = vector.load %arg14[%c0_37, %c64] : memref<32x384xbf16, #tpu.memory_space<vmem>>, vector<16x32xbf16>
    %c0_38 = arith.constant 0 : index
    %c192 = arith.constant 192 : index
    %79 = vector.load %arg14[%c0_38, %c192] : memref<32x384xbf16, #tpu.memory_space<vmem>>, vector<16x32xbf16>
    %c0_39 = arith.constant 0 : index
    %c320 = arith.constant 320 : index
    %80 = vector.load %arg14[%c0_39, %c320] : memref<32x384xbf16, #tpu.memory_space<vmem>>, vector<16x32xbf16>
    %cst_40 = arith.constant dense<0.000000e+00> : vector<16x16xf32>
    %81 = tpu.matmul %78, %79, %cst_40 {dimension_numbers = #tpu.dot_dimension_numbers<[1], [1], [0], [0], [0, 0, 1, 0], [], []>} : vector<16x32xbf16>, vector<16x32xbf16>, vector<16x16xf32> -> vector<16x16xf32>
    %cst_41 = arith.constant 0.0883883461 : f32
    %82 = vector.broadcast %cst_41 : f32 to vector<16x16xf32>
    %83 = arith.mulf %81, %82 : vector<16x16xf32>
    %84 = arith.addf %83, %35 : vector<16x16xf32>
    %cst_42 = arith.constant dense<0xFF800000> : vector<16xf32>
    %85 = vector.multi_reduction <maximumf>, %84, %cst_42 [1] : vector<16x16xf32> to vector<16xf32>
    %86 = vector.shape_cast %85 : vector<16xf32> to vector<16x1xf32>
    %87 = vector.broadcast %86 : vector<16x1xf32> to vector<16x16xf32>
    %88 = arith.subf %84, %87 : vector<16x16xf32>
    %89 = math.exp %88 : vector<16x16xf32>
    %cst_43 = arith.constant dense<0.000000e+00> : vector<16xf32>
    %90 = vector.multi_reduction <add>, %89, %cst_43 [1] : vector<16x16xf32> to vector<16xf32>
    %91 = vector.shape_cast %90 : vector<16xf32> to vector<16x1xf32>
    %92 = tpu.reciprocal %91 {approx = true} : vector<16x1xf32> -> vector<16x1xf32>
    %93 = vector.broadcast %92 : vector<16x1xf32> to vector<16x16xf32>
    %94 = arith.mulf %89, %93 : vector<16x16xf32>
    %95 = arith.truncf %94 : vector<16x16xf32> to vector<16x16xbf16>
    %cst_44 = arith.constant dense<0.000000e+00> : vector<16x32xf32>
    %96 = tpu.matmul %95, %80, %cst_44 {dimension_numbers = #tpu.dot_dimension_numbers<[1], [0], [0], [1], [0, 0, 1, 1], [], []>} : vector<16x16xbf16>, vector<16x32xbf16>, vector<16x32xf32> -> vector<16x32xf32>
    %97 = arith.truncf %96 : vector<16x32xf32> to vector<16x32xbf16>
    %c0_45 = arith.constant 0 : index
    %c64_46 = arith.constant 64 : index
    %98 = vector.load %arg15[%c0_45, %c64_46] : memref<32x128xbf16, #tpu.memory_space<vmem>>, vector<16x32xbf16>
    tpu.vector_store %arg15[%c0_45, %c64_46], %97 {strides = array<i32>} : memref<32x128xbf16, #tpu.memory_space<vmem>>, vector<16x32xbf16>,
    %c0_47 = arith.constant 0 : index
    %c96 = arith.constant 96 : index
    %99 = vector.load %arg14[%c0_47, %c96] : memref<32x384xbf16, #tpu.memory_space<vmem>>, vector<16x32xbf16>
    %c0_48 = arith.constant 0 : index
    %c224 = arith.constant 224 : index
    %100 = vector.load %arg14[%c0_48, %c224] : memref<32x384xbf16, #tpu.memory_space<vmem>>, vector<16x32xbf16>
    %c0_49 = arith.constant 0 : index
    %c352 = arith.constant 352 : index
    %101 = vector.load %arg14[%c0_49, %c352] : memref<32x384xbf16, #tpu.memory_space<vmem>>, vector<16x32xbf16>
    %cst_50 = arith.constant dense<0.000000e+00> : vector<16x16xf32>
    %102 = tpu.matmul %99, %100, %cst_50 {dimension_numbers = #tpu.dot_dimension_numbers<[1], [1], [0], [0], [0, 0, 1, 0], [], []>} : vector<16x32xbf16>, vector<16x32xbf16>, vector<16x16xf32> -> vector<16x16xf32>
    %cst_51 = arith.constant 0.0883883461 : f32
    %103 = vector.broadcast %cst_51 : f32 to vector<16x16xf32>
    %104 = arith.mulf %102, %103 : vector<16x16xf32>
    %105 = arith.addf %104, %35 : vector<16x16xf32>
    %cst_52 = arith.constant dense<0xFF800000> : vector<16xf32>
    %106 = vector.multi_reduction <maximumf>, %105, %cst_52 [1] : vector<16x16xf32> to vector<16xf32>
    %107 = vector.shape_cast %106 : vector<16xf32> to vector<16x1xf32>
    %108 = vector.broadcast %107 : vector<16x1xf32> to vector<16x16xf32>
    %109 = arith.subf %105, %108 : vector<16x16xf32>
    %110 = math.exp %109 : vector<16x16xf32>
    %cst_53 = arith.constant dense<0.000000e+00> : vector<16xf32>
    %111 = vector.multi_reduction <add>, %110, %cst_53 [1] : vector<16x16xf32> to vector<16xf32>
    %112 = vector.shape_cast %111 : vector<16xf32> to vector<16x1xf32>
    %113 = tpu.reciprocal %112 {approx = true} : vector<16x1xf32> -> vector<16x1xf32>
    %114 = vector.broadcast %113 : vector<16x1xf32> to vector<16x16xf32>
    %115 = arith.mulf %110, %114 : vector<16x16xf32>
    %116 = arith.truncf %115 : vector<16x16xf32> to vector<16x16xbf16>
    %cst_54 = arith.constant dense<0.000000e+00> : vector<16x32xf32>
    %117 = tpu.matmul %116, %101, %cst_54 {dimension_numbers = #tpu.dot_dimension_numbers<[1], [0], [0], [1], [0, 0, 1, 1], [], []>} : vector<16x16xbf16>, vector<16x32xbf16>, vector<16x32xf32> -> vector<16x32xf32>
    %118 = arith.truncf %117 : vector<16x32xf32> to vector<16x32xbf16>
    %c0_55 = arith.constant 0 : index
    %c96_56 = arith.constant 96 : index
    %119 = vector.load %arg15[%c0_55, %c96_56] : memref<32x128xbf16, #tpu.memory_space<vmem>>, vector<16x32xbf16>
    tpu.vector_store %arg15[%c0_55, %c96_56], %118 {strides = array<i32>} : memref<32x128xbf16, #tpu.memory_space<vmem>>, vector<16x32xbf16>,
    %c16 = arith.constant 16 : index
    %c0_57 = arith.constant 0 : index
    %120 = vector.load %arg14[%c16, %c0_57] : memref<32x384xbf16, #tpu.memory_space<vmem>>, vector<16x32xbf16>
    %c16_58 = arith.constant 16 : index
    %c128_59 = arith.constant 128 : index
    %121 = vector.load %arg14[%c16_58, %c128_59] : memref<32x384xbf16, #tpu.memory_space<vmem>>, vector<16x32xbf16>
    %c16_60 = arith.constant 16 : index
    %c256_61 = arith.constant 256 : index
    %122 = vector.load %arg14[%c16_60, %c256_61] : memref<32x384xbf16, #tpu.memory_space<vmem>>, vector<16x32xbf16>
    %cst_62 = arith.constant dense<0.000000e+00> : vector<16x16xf32>
    %123 = tpu.matmul %120, %121, %cst_62 {dimension_numbers = #tpu.dot_dimension_numbers<[1], [1], [0], [0], [0, 0, 1, 0], [], []>} : vector<16x32xbf16>, vector<16x32xbf16>, vector<16x16xf32> -> vector<16x16xf32>
    %cst_63 = arith.constant 0.0883883461 : f32
    %124 = vector.broadcast %cst_63 : f32 to vector<16x16xf32>
    %125 = arith.mulf %123, %124 : vector<16x16xf32>
    %126 = arith.addf %125, %35 : vector<16x16xf32>
    %cst_64 = arith.constant dense<0xFF800000> : vector<16xf32>
    %127 = vector.multi_reduction <maximumf>, %126, %cst_64 [1] : vector<16x16xf32> to vector<16xf32>
    %128 = vector.shape_cast %127 : vector<16xf32> to vector<16x1xf32>
    %129 = vector.broadcast %128 : vector<16x1xf32> to vector<16x16xf32>
    %130 = arith.subf %126, %129 : vector<16x16xf32>
    %131 = math.exp %130 : vector<16x16xf32>
    %cst_65 = arith.constant dense<0.000000e+00> : vector<16xf32>
    %132 = vector.multi_reduction <add>, %131, %cst_65 [1] : vector<16x16xf32> to vector<16xf32>
    %133 = vector.shape_cast %132 : vector<16xf32> to vector<16x1xf32>
    %134 = tpu.reciprocal %133 {approx = true} : vector<16x1xf32> -> vector<16x1xf32>
    %135 = vector.broadcast %134 : vector<16x1xf32> to vector<16x16xf32>
    %136 = arith.mulf %131, %135 : vector<16x16xf32>
    %137 = arith.truncf %136 : vector<16x16xf32> to vector<16x16xbf16>
    %cst_66 = arith.constant dense<0.000000e+00> : vector<16x32xf32>
    %138 = tpu.matmul %137, %122, %cst_66 {dimension_numbers = #tpu.dot_dimension_numbers<[1], [0], [0], [1], [0, 0, 1, 1], [], []>} : vector<16x16xbf16>, vector<16x32xbf16>, vector<16x32xf32> -> vector<16x32xf32>
    %139 = arith.truncf %138 : vector<16x32xf32> to vector<16x32xbf16>
    %c16_67 = arith.constant 16 : index
    %c0_68 = arith.constant 0 : index
    %140 = vector.load %arg15[%c16_67, %c0_68] : memref<32x128xbf16, #tpu.memory_space<vmem>>, vector<16x32xbf16>
    tpu.vector_store %arg15[%c16_67, %c0_68], %139 {strides = array<i32>} : memref<32x128xbf16, #tpu.memory_space<vmem>>, vector<16x32xbf16>,
    %c16_69 = arith.constant 16 : index
    %c32_70 = arith.constant 32 : index
    %141 = vector.load %arg14[%c16_69, %c32_70] : memref<32x384xbf16, #tpu.memory_space<vmem>>, vector<16x32xbf16>
    %c16_71 = arith.constant 16 : index
    %c160_72 = arith.constant 160 : index
    %142 = vector.load %arg14[%c16_71, %c160_72] : memref<32x384xbf16, #tpu.memory_space<vmem>>, vector<16x32xbf16>
    %c16_73 = arith.constant 16 : index
    %c288_74 = arith.constant 288 : index
    %143 = vector.load %arg14[%c16_73, %c288_74] : memref<32x384xbf16, #tpu.memory_space<vmem>>, vector<16x32xbf16>
    %cst_75 = arith.constant dense<0.000000e+00> : vector<16x16xf32>
    %144 = tpu.matmul %141, %142, %cst_75 {dimension_numbers = #tpu.dot_dimension_numbers<[1], [1], [0], [0], [0, 0, 1, 0], [], []>} : vector<16x32xbf16>, vector<16x32xbf16>, vector<16x16xf32> -> vector<16x16xf32>
    %cst_76 = arith.constant 0.0883883461 : f32
    %145 = vector.broadcast %cst_76 : f32 to vector<16x16xf32>
    %146 = arith.mulf %144, %145 : vector<16x16xf32>
    %147 = arith.addf %146, %35 : vector<16x16xf32>
    %cst_77 = arith.constant dense<0xFF800000> : vector<16xf32>
    %148 = vector.multi_reduction <maximumf>, %147, %cst_77 [1] : vector<16x16xf32> to vector<16xf32>
    %149 = vector.shape_cast %148 : vector<16xf32> to vector<16x1xf32>
    %150 = vector.broadcast %149 : vector<16x1xf32> to vector<16x16xf32>
    %151 = arith.subf %147, %150 : vector<16x16xf32>
    %152 = math.exp %151 : vector<16x16xf32>
    %cst_78 = arith.constant dense<0.000000e+00> : vector<16xf32>
    %153 = vector.multi_reduction <add>, %152, %cst_78 [1] : vector<16x16xf32> to vector<16xf32>
    %154 = vector.shape_cast %153 : vector<16xf32> to vector<16x1xf32>
    %155 = tpu.reciprocal %154 {approx = true} : vector<16x1xf32> -> vector<16x1xf32>
    %156 = vector.broadcast %155 : vector<16x1xf32> to vector<16x16xf32>
    %157 = arith.mulf %152, %156 : vector<16x16xf32>
    %158 = arith.truncf %157 : vector<16x16xf32> to vector<16x16xbf16>
    %cst_79 = arith.constant dense<0.000000e+00> : vector<16x32xf32>
    %159 = tpu.matmul %158, %143, %cst_79 {dimension_numbers = #tpu.dot_dimension_numbers<[1], [0], [0], [1], [0, 0, 1, 1], [], []>} : vector<16x16xbf16>, vector<16x32xbf16>, vector<16x32xf32> -> vector<16x32xf32>
    %160 = arith.truncf %159 : vector<16x32xf32> to vector<16x32xbf16>
    %c16_80 = arith.constant 16 : index
    %c32_81 = arith.constant 32 : index
    %161 = vector.load %arg15[%c16_80, %c32_81] : memref<32x128xbf16, #tpu.memory_space<vmem>>, vector<16x32xbf16>
    tpu.vector_store %arg15[%c16_80, %c32_81], %160 {strides = array<i32>} : memref<32x128xbf16, #tpu.memory_space<vmem>>, vector<16x32xbf16>,
    %c16_82 = arith.constant 16 : index
    %c64_83 = arith.constant 64 : index
    %162 = vector.load %arg14[%c16_82, %c64_83] : memref<32x384xbf16, #tpu.memory_space<vmem>>, vector<16x32xbf16>
    %c16_84 = arith.constant 16 : index
    %c192_85 = arith.constant 192 : index
    %163 = vector.load %arg14[%c16_84, %c192_85] : memref<32x384xbf16, #tpu.memory_space<vmem>>, vector<16x32xbf16>
    %c16_86 = arith.constant 16 : index
    %c320_87 = arith.constant 320 : index
    %164 = vector.load %arg14[%c16_86, %c320_87] : memref<32x384xbf16, #tpu.memory_space<vmem>>, vector<16x32xbf16>
    %cst_88 = arith.constant dense<0.000000e+00> : vector<16x16xf32>
    %165 = tpu.matmul %162, %163, %cst_88 {dimension_numbers = #tpu.dot_dimension_numbers<[1], [1], [0], [0], [0, 0, 1, 0], [], []>} : vector<16x32xbf16>, vector<16x32xbf16>, vector<16x16xf32> -> vector<16x16xf32>
    %cst_89 = arith.constant 0.0883883461 : f32
    %166 = vector.broadcast %cst_89 : f32 to vector<16x16xf32>
    %167 = arith.mulf %165, %166 : vector<16x16xf32>
    %168 = arith.addf %167, %35 : vector<16x16xf32>
    %cst_90 = arith.constant dense<0xFF800000> : vector<16xf32>
    %169 = vector.multi_reduction <maximumf>, %168, %cst_90 [1] : vector<16x16xf32> to vector<16xf32>
    %170 = vector.shape_cast %169 : vector<16xf32> to vector<16x1xf32>
    %171 = vector.broadcast %170 : vector<16x1xf32> to vector<16x16xf32>
    %172 = arith.subf %168, %171 : vector<16x16xf32>
    %173 = math.exp %172 : vector<16x16xf32>
    %cst_91 = arith.constant dense<0.000000e+00> : vector<16xf32>
    %174 = vector.multi_reduction <add>, %173, %cst_91 [1] : vector<16x16xf32> to vector<16xf32>
    %175 = vector.shape_cast %174 : vector<16xf32> to vector<16x1xf32>
    %176 = tpu.reciprocal %175 {approx = true} : vector<16x1xf32> -> vector<16x1xf32>
    %177 = vector.broadcast %176 : vector<16x1xf32> to vector<16x16xf32>
    %178 = arith.mulf %173, %177 : vector<16x16xf32>
    %179 = arith.truncf %178 : vector<16x16xf32> to vector<16x16xbf16>
    %cst_92 = arith.constant dense<0.000000e+00> : vector<16x32xf32>
    %180 = tpu.matmul %179, %164, %cst_92 {dimension_numbers = #tpu.dot_dimension_numbers<[1], [0], [0], [1], [0, 0, 1, 1], [], []>} : vector<16x16xbf16>, vector<16x32xbf16>, vector<16x32xf32> -> vector<16x32xf32>
    %181 = arith.truncf %180 : vector<16x32xf32> to vector<16x32xbf16>
    %c16_93 = arith.constant 16 : index
    %c64_94 = arith.constant 64 : index
    %182 = vector.load %arg15[%c16_93, %c64_94] : memref<32x128xbf16, #tpu.memory_space<vmem>>, vector<16x32xbf16>
    tpu.vector_store %arg15[%c16_93, %c64_94], %181 {strides = array<i32>} : memref<32x128xbf16, #tpu.memory_space<vmem>>, vector<16x32xbf16>,
    %c16_95 = arith.constant 16 : index
    %c96_96 = arith.constant 96 : index
    %183 = vector.load %arg14[%c16_95, %c96_96] : memref<32x384xbf16, #tpu.memory_space<vmem>>, vector<16x32xbf16>
    %c16_97 = arith.constant 16 : index
    %c224_98 = arith.constant 224 : index
    %184 = vector.load %arg14[%c16_97, %c224_98] : memref<32x384xbf16, #tpu.memory_space<vmem>>, vector<16x32xbf16>
    %c16_99 = arith.constant 16 : index
    %c352_100 = arith.constant 352 : index
    %185 = vector.load %arg14[%c16_99, %c352_100] : memref<32x384xbf16, #tpu.memory_space<vmem>>, vector<16x32xbf16>
    %cst_101 = arith.constant dense<0.000000e+00> : vector<16x16xf32>
    %186 = tpu.matmul %183, %184, %cst_101 {dimension_numbers = #tpu.dot_dimension_numbers<[1], [1], [0], [0], [0, 0, 1, 0], [], []>} : vector<16x32xbf16>, vector<16x32xbf16>, vector<16x16xf32> -> vector<16x16xf32>
    %cst_102 = arith.constant 0.0883883461 : f32
    %187 = vector.broadcast %cst_102 : f32 to vector<16x16xf32>
    %188 = arith.mulf %186, %187 : vector<16x16xf32>
    %189 = arith.addf %188, %35 : vector<16x16xf32>
    %cst_103 = arith.constant dense<0xFF800000> : vector<16xf32>
    %190 = vector.multi_reduction <maximumf>, %189, %cst_103 [1] : vector<16x16xf32> to vector<16xf32>
    %191 = vector.shape_cast %190 : vector<16xf32> to vector<16x1xf32>
    %192 = vector.broadcast %191 : vector<16x1xf32> to vector<16x16xf32>
    %193 = arith.subf %189, %192 : vector<16x16xf32>
    %194 = math.exp %193 : vector<16x16xf32>
    %cst_104 = arith.constant dense<0.000000e+00> : vector<16xf32>
    %195 = vector.multi_reduction <add>, %194, %cst_104 [1] : vector<16x16xf32> to vector<16xf32>
    %196 = vector.shape_cast %195 : vector<16xf32> to vector<16x1xf32>
    %197 = tpu.reciprocal %196 {approx = true} : vector<16x1xf32> -> vector<16x1xf32>
    %198 = vector.broadcast %197 : vector<16x1xf32> to vector<16x16xf32>
    %199 = arith.mulf %194, %198 : vector<16x16xf32>
    %200 = arith.truncf %199 : vector<16x16xf32> to vector<16x16xbf16>
    %cst_105 = arith.constant dense<0.000000e+00> : vector<16x32xf32>
    %201 = tpu.matmul %200, %185, %cst_105 {dimension_numbers = #tpu.dot_dimension_numbers<[1], [0], [0], [1], [0, 0, 1, 1], [], []>} : vector<16x16xbf16>, vector<16x32xbf16>, vector<16x32xf32> -> vector<16x32xf32>
    %202 = arith.truncf %201 : vector<16x32xf32> to vector<16x32xbf16>
    %c16_106 = arith.constant 16 : index
    %c96_107 = arith.constant 96 : index
    %203 = vector.load %arg15[%c16_106, %c96_107] : memref<32x128xbf16, #tpu.memory_space<vmem>>, vector<16x32xbf16>
    tpu.vector_store %arg15[%c16_106, %c96_107], %202 {strides = array<i32>} : memref<32x128xbf16, #tpu.memory_space<vmem>>, vector<16x32xbf16>,
    %c0_108 = arith.constant 0 : index
    %c0_109 = arith.constant 0 : index
    %204 = vector.load %arg15[%c0_108, %c0_109] : memref<32x128xbf16, #tpu.memory_space<vmem>>, vector<32x128xbf16>
    %c0_110 = arith.constant 0 : index
    %c0_111 = arith.constant 0 : index
    %205 = vector.load %arg5[%c0_110, %c0_111] : memref<128x128xbf16, #tpu.memory_space<vmem>>, vector<128x128xbf16>
    %cst_112 = arith.constant dense<0.000000e+00> : vector<32x128xf32>
    %206 = tpu.matmul %204, %205, %cst_112 {dimension_numbers = #tpu.dot_dimension_numbers<[1], [0], [0], [1], [0, 0, 1, 1], [], []>} : vector<32x128xbf16>, vector<128x128xbf16>, vector<32x128xf32> -> vector<32x128xf32>
    %c0_113 = arith.constant 0 : index
    %c0_114 = arith.constant 0 : index
    %207 = vector.load %arg6[%c0_113, %c0_114] : memref<1x128xf32, #tpu.memory_space<vmem>>, vector<1x128xf32>
    %208 = vector.broadcast %207 : vector<1x128xf32> to vector<32x128xf32>
    %209 = arith.addf %206, %208 : vector<32x128xf32>
    %c0_115 = arith.constant 0 : index
    %c0_116 = arith.constant 0 : index
    %210 = vector.load %arg1[%c0_115, %c0_116] : memref<32x128xf32, #tpu.memory_space<vmem>>, vector<32x128xf32>
    %211 = arith.addf %210, %209 : vector<32x128xf32>
    %c0_117 = arith.constant 0 : index
    %c0_118 = arith.constant 0 : index
    %212 = vector.load %arg7[%c0_117, %c0_118] : memref<1x128xf32, #tpu.memory_space<vmem>>, vector<1x128xf32>
    %c0_119 = arith.constant 0 : index
    %c0_120 = arith.constant 0 : index
    %213 = vector.load %arg8[%c0_119, %c0_120] : memref<1x128xf32, #tpu.memory_space<vmem>>, vector<1x128xf32>
    %cst_121 = arith.constant dense<0.000000e+00> : vector<32xf32>
    %214 = vector.multi_reduction <add>, %211, %cst_121 [1] : vector<32x128xf32> to vector<32xf32>
    %215 = vector.shape_cast %214 : vector<32xf32> to vector<32x1xf32>
    %cst_122 = arith.constant 1.280000e+02 : f32
    %216 = vector.broadcast %cst_122 : f32 to vector<32x1xf32>
    %217 = arith.divf %215, %216 : vector<32x1xf32>
    %218 = vector.broadcast %217 : vector<32x1xf32> to vector<32x128xf32>
    %219 = arith.subf %211, %218 : vector<32x128xf32>
    %220 = arith.mulf %219, %219 : vector<32x128xf32>
    %cst_123 = arith.constant dense<0.000000e+00> : vector<32xf32>
    %221 = vector.multi_reduction <add>, %220, %cst_123 [1] : vector<32x128xf32> to vector<32xf32>
    %222 = vector.shape_cast %221 : vector<32xf32> to vector<32x1xf32>
    %cst_124 = arith.constant 1.280000e+02 : f32
    %223 = vector.broadcast %cst_124 : f32 to vector<32x1xf32>
    %224 = arith.divf %222, %223 : vector<32x1xf32>
    %225 = vector.broadcast %217 : vector<32x1xf32> to vector<32x128xf32>
    %226 = arith.subf %211, %225 : vector<32x128xf32>
    %cst_125 = arith.constant 9.99999974E-6 : f32
    %227 = vector.broadcast %cst_125 : f32 to vector<32x1xf32>
    %228 = arith.addf %224, %227 : vector<32x1xf32>
    %229 = math.rsqrt %228 : vector<32x1xf32>
    %230 = vector.broadcast %229 : vector<32x1xf32> to vector<32x128xf32>
    %231 = arith.mulf %226, %230 : vector<32x128xf32>
    %232 = vector.broadcast %212 : vector<1x128xf32> to vector<32x128xf32>
    %233 = arith.mulf %231, %232 : vector<32x128xf32>
    %234 = vector.broadcast %213 : vector<1x128xf32> to vector<32x128xf32>
    %235 = arith.addf %233, %234 : vector<32x128xf32>
    %236 = arith.truncf %235 : vector<32x128xf32> to vector<32x128xbf16>
    %c0_126 = arith.constant 0 : index
    %c0_127 = arith.constant 0 : index
    %237 = vector.load %arg9[%c0_126, %c0_127] : memref<128x512xbf16, #tpu.memory_space<vmem>>, vector<128x512xbf16>
    %cst_128 = arith.constant dense<0.000000e+00> : vector<32x512xf32>
    %238 = tpu.matmul %236, %237, %cst_128 {dimension_numbers = #tpu.dot_dimension_numbers<[1], [0], [0], [1], [0, 0, 1, 1], [], []>} : vector<32x128xbf16>, vector<128x512xbf16>, vector<32x512xf32> -> vector<32x512xf32>
    %c0_129 = arith.constant 0 : index
    %c0_130 = arith.constant 0 : index
    %239 = vector.load %arg10[%c0_129, %c0_130] : memref<1x512xf32, #tpu.memory_space<vmem>>, vector<1x512xf32>
    %240 = vector.broadcast %239 : vector<1x512xf32> to vector<32x512xf32>
    %241 = arith.addf %238, %240 : vector<32x512xf32>
    %cst_131 = arith.constant 0.000000e+00 : f32
    %242 = vector.broadcast %cst_131 : f32 to vector<32x512xf32>
    %243 = arith.maximumf %241, %242 : vector<32x512xf32>
    %244 = arith.truncf %243 : vector<32x512xf32> to vector<32x512xbf16>
    %c0_132 = arith.constant 0 : index
    %c0_133 = arith.constant 0 : index
    %245 = vector.load %arg11[%c0_132, %c0_133] : memref<512x128xbf16, #tpu.memory_space<vmem>>, vector<512x128xbf16>
    %cst_134 = arith.constant dense<0.000000e+00> : vector<32x128xf32>
    %246 = tpu.matmul %244, %245, %cst_134 {dimension_numbers = #tpu.dot_dimension_numbers<[1], [0], [0], [1], [0, 0, 1, 1], [], []>} : vector<32x512xbf16>, vector<512x128xbf16>, vector<32x128xf32> -> vector<32x128xf32>
    %c0_135 = arith.constant 0 : index
    %c0_136 = arith.constant 0 : index
    %247 = vector.load %arg12[%c0_135, %c0_136] : memref<1x128xf32, #tpu.memory_space<vmem>>, vector<1x128xf32>
    %248 = vector.broadcast %247 : vector<1x128xf32> to vector<32x128xf32>
    %249 = arith.addf %246, %248 : vector<32x128xf32>
    %250 = arith.addf %211, %249 : vector<32x128xf32>
    %c0_137 = arith.constant 0 : index
    %c0_138 = arith.constant 0 : index
    %251 = vector.load %arg13[%c0_137, %c0_138] : memref<32x128xf32, #tpu.memory_space<vmem>>, vector<32x128xf32>
    tpu.vector_store %arg13[%c0_137, %c0_138], %250 {strides = array<i32>} : memref<32x128xf32, #tpu.memory_space<vmem>>, vector<32x128xf32>,
    return
  }
  func.func @transform_0(%arg0: i32) -> (i32, i32) {
    %c0_i32 = arith.constant 0 : i32
    %c0_i32_0 = arith.constant 0 : i32
    return %arg0, %c0_i32 : i32, i32
  }
  func.func @transform_1(%arg0: i32) -> (i32, i32) {
    %c0_i32 = arith.constant 0 : i32
    %c0_i32_0 = arith.constant 0 : i32
    %c0_i32_1 = arith.constant 0 : i32
    return %c0_i32, %c0_i32_0 : i32, i32
  }
  func.func @transform_2(%arg0: i32) -> (i32, i32) {
    %c0_i32 = arith.constant 0 : i32
    %c0_i32_0 = arith.constant 0 : i32
    %c0_i32_1 = arith.constant 0 : i32
    return %c0_i32, %c0_i32_0 : i32, i32
  }
  func.func @transform_3(%arg0: i32) -> (i32, i32) {
    %c0_i32 = arith.constant 0 : i32
    %c0_i32_0 = arith.constant 0 : i32
    %c0_i32_1 = arith.constant 0 : i32
    return %c0_i32, %c0_i32_0 : i32, i32
  }
  func.func @transform_4(%arg0: i32) -> (i32, i32) {
    %c0_i32 = arith.constant 0 : i32
    %c0_i32_0 = arith.constant 0 : i32
    %c0_i32_1 = arith.constant 0 : i32
    return %c0_i32, %c0_i32_0 : i32, i32
  }
  func.func @transform_5(%arg0: i32) -> (i32, i32) {
    %c0_i32 = arith.constant 0 : i32
    %c0_i32_0 = arith.constant 0 : i32
    %c0_i32_1 = arith.constant 0 : i32
    return %c0_i32, %c0_i32_0 : i32, i32
  }
  func.func @transform_6(%arg0: i32) -> (i32, i32) {
    %c0_i32 = arith.constant 0 : i32
    %c0_i32_0 = arith.constant 0 : i32
    %c0_i32_1 = arith.constant 0 : i32
    return %c0_i32, %c0_i32_0 : i32, i32
  }
  func.func @transform_7(%arg0: i32) -> (i32, i32) {
    %c0_i32 = arith.constant 0 : i32
    %c0_i32_0 = arith.constant 0 : i32
    %c0_i32_1 = arith.constant 0 : i32
    return %c0_i32, %c0_i32_0 : i32, i32
  }
  func.func @transform_8(%arg0: i32) -> (i32, i32) {
    %c0_i32 = arith.constant 0 : i32
    %c0_i32_0 = arith.constant 0 : i32
    %c0_i32_1 = arith.constant 0 : i32
    return %c0_i32, %c0_i32_0 : i32, i32
  }
  func.func @transform_9(%arg0: i32) -> (i32, i32) {
    %c0_i32 = arith.constant 0 : i32
    %c0_i32_0 = arith.constant 0 : i32
    %c0_i32_1 = arith.constant 0 : i32
    return %c0_i32, %c0_i32_0 : i32, i32
  }
  func.func @transform_10(%arg0: i32) -> (i32, i32) {
    %c0_i32 = arith.constant 0 : i32
    %c0_i32_0 = arith.constant 0 : i32
    %c0_i32_1 = arith.constant 0 : i32
    return %c0_i32, %c0_i32_0 : i32, i32
  }
  func.func @transform_11(%arg0: i32) -> (i32, i32) {
    %c0_i32 = arith.constant 0 : i32
    %c0_i32_0 = arith.constant 0 : i32
    %c0_i32_1 = arith.constant 0 : i32
    return %c0_i32, %c0_i32_0 : i32, i32
  }
  func.func @transform_12(%arg0: i32) -> (i32, i32) {
    %c0_i32 = arith.constant 0 : i32
    %c0_i32_0 = arith.constant 0 : i32
    return %arg0, %c0_i32 : i32, i32
  }
}

</mosaic_0001>

<bundles_post_ra>
// kernel: tpu_custom_call.1
= control target key start
LH: loop header
LB: loop body
LE: loop exit
PB: predicated region body
PF: predicated region fallthrough
CT: control target
= control target key end

     0   :  { %s4614_s0 = inlined_call_operand.hbm [shape: f32[128,128], index: 0, kind: input, shape index: {}]   ;;  %s4615_s1 = inlined_call_operand.vmem [shape: f32[1,128], index: 1, kind: input, shape index: {}]   ;;  %s4616_s2 = inlined_call_operand.vmem [shape: f32[1,128], index: 2, kind: input, shape index: {}]   ;;  %s4617_s3 = inlined_call_operand.hbm [shape: bf16[128,384], index: 3, kind: input, shape index: {}]   ;;  %s4618_s4 = inlined_call_operand.hbm [shape: bf16[128,128], index: 4, kind: input, shape index: {}]   ;;  %s4619_s5 = inlined_call_operand.vmem [shape: f32[1,128], index: 5, kind: input, shape index: {}]   ;;  %s4620_s6 = inlined_call_operand.vmem [shape: f32[1,128], index: 6, kind: input, shape index: {}]   ;;  %s4621_s7 = inlined_call_operand.vmem [shape: f32[1,128], index: 7, kind: input, shape index: {}]   ;;  %s4622_s8 = inlined_call_operand.hbm [shape: bf16[128,512], index: 8, kind: input, shape index: {}]   ;;  %s4623_s9 = inlined_call_operand.vmem [shape: f32[1,512], index: 9, kind: input, shape index: {}]   ;;  %s4624_s10 = inlined_call_operand.hbm [shape: bf16[512,128], index: 10, kind: input, shape index: {}]   ;;  %s4625_s11 = inlined_call_operand.vmem [shape: f32[1,128], index: 11, kind: input, shape index: {}]   ;;  %s4626_s12 = inlined_call_operand.hbm [shape: f32[128,128], index: 12, kind: output, shape index: {}]  }
   0x1   :  { %4633 = sst [smem:[#allocation20_spill]] %s4617_s3 }
   0x2   :  { %4634 = sst [smem:[#allocation21_spill]] %s4623_s9 }
   0x3   :  { %4635 = sst [smem:[#allocation22_spill]] %s4625_s11 }
   0x4   :  { %4636 = sst [smem:[#allocation23_spill]] %s4626_s12 }
   0x5   :  { %17 = vsyncpa [#allocation5], 0 }
   0x6   :  { %19 = vsyncpa [#allocation5 + $0x1], 0 }
   0x7   :  { %20 = vsyncpa [#allocation8], 0 }
   0x8   :  { %21 = vsyncpa [#allocation11], 0 }
   0x9   :  { %22 = vsyncpa [#allocation6], 0 }
   0xa   :  { %24 = vsyncpa [#allocation6 + $0x1], 0  ;;  %s3954_s21 = smov 0   ;;  %s3956_s22 = smov 0  }
   0xb   :  { %s3958_s23 = smov 0   ;;  %s3960_s24 = smov 0  }
   0xc LB: > { %4637 = sst [smem:[#allocation18_spill]] %s3852_s21  ;;  %s3975_s25 = sadd.s32 4294967295, %s3864_s24   ;;  %s3864_s24 = sphi %s3960_s24, %s4663_s24   ;;  %s3860_s23 = sphi %s3958_s23, %s4662_s23   ;;  %s3856_s22 = sphi %s3956_s22, %s4661_s22   ;;  %s3852_s21 = sphi %s3954_s21, %s4660_s21  }
   0xd   : > { %s2958_s26 = sadd.s32 4294967294, %s3864_s24   ;;  %p50_p0 = scmp.ne.s32.totalorder %s3856_s22, %s3852_s21 }
   0xe   : > { %p4628_p1 = scmp.eq.s32.totalorder %s3975_s25, 0  ;;  %p311_p3 = scmp.eq.s32.totalorder %s2958_s26, 3 }
   0xf   : > { %p2959_p5 = scmp.ge.s32.totalorder %s3864_s24, 1  ;;  %p318_p7 = scmp.lt.s32.totalorder %s3864_s24, 5 }
  0x10   : > { %p3984_p4 = por %p4628_p1, %p50_p0  ;;  %p3989_p6 = por %p311_p3, %p50_p0 }
  0x11   : > { %p3994_p8 = pnand %p2959_p5, %p318_p7  ;;  %s3866_s30 = smov [#allocation7]  }
  0x12   : > { %s4638_s27 = scalar_select %p3984_p4, 1, 0 }
  0x13   : > { %s4639_s28 = scalar_select %p3989_p6, 1, 0 }
  0x14   : > { %s4641_s29 = scalar_select %p3994_p8, 1, 0 }
  0x15   : > { %4640 = sst [smem:[#allocation19_spill]] %s4639_s28  ;;  %s336_s13 = sshll.u32 %s3866_s30, 4  ;;  %s337_s13 = int_to_ptr.vmem [resolvable:$true] %s336_s13 }
  0x16   : > { %p3364_p9 = pneg %p3994_p8  ;;  %s3867_s15 = smov [#allocation10]  }
  0x17   : > { %s371_s16 = sshll.u32 %s3867_s15, 4  ;;  %s4643_s3 = sld [smem:[#allocation20_spill]]  ;;  %s4006_s16 = int_to_ptr.vmem [resolvable:$true] %s371_s16 }
  0x18   : > { %p4002_p10 = pnand %p3364_p9, %p4628_p1 }
  0x1a   : > { %p4016_p12 = pneg %p4002_p10 }
  0x1d   : > { %s3648_s19 = scalar_lea.hbm %s4643_s3, 3072 }
  0x1e   : > { %p3649_p11 = scmp.ne.s32.totalorder %s4643_s3, %s3648_s19  ;;  %p3655_p3 = scmp.lt.u32.totalorder %s3648_s19, %s4643_s3 }
  0x20   : > { %p3651_p13 = pnand %p4016_p12, %p3649_p11 }
  0x22   : > { %p3652_p0 = pneg %p3651_p13 }
  0x24   : > { %p3657_p5 = pnand %p3655_p3, %p3652_p0 }
  0x26   : > { %3660 = shalt.err (!%p3657_p5)
}
  0x27   : > { %s3661_s17 = scalar_lea.vmem %s337_s13, 3072  ;;  %p3669_p2 = scmp.lt.s32.totalorder %s337_s13, %s337_s13 }
  0x28   : > { %p3662_p7 = scmp.ne.s32.totalorder %s337_s13, %s3661_s17  ;;  %p3670_p6 = scmp.lt.s32.totalorder %s3661_s17, %s3661_s17 }
  0x2a   : > { %p3664_p9 = pnand %p3662_p7, %p4016_p12  ;;  %p3671_p4 = por %p3670_p6, %p3669_p2 }
  0x2c   : > { %p3665_p1 = pneg %p3664_p9 }
  0x2e   : > { %p3672_p8 = pnand %p3671_p4, %p3665_p1 }
  0x30   : > { %3675 = shalt.err (!%p3672_p8)
}
  0x31   : > { %s3868_s18 = smov 192   ;;  %s3869_s20 = smov 12  }
  0x32   : > { %3367 = dma.hbm_to_vmem [thread:$0]  (!%p4002_p10), %s4643_s3, 3072, %s337_s13, [#allocation8], %s3868_s18, %s3868_s18, %s3869_s20  }
  0x33   : > { %s3676_s21 = scalar_lea.hbm %s4622_s8, 4096 }
  0x34   : > { %p3677_p11 = scmp.ne.s32.totalorder %s4622_s8, %s3676_s21  ;;  %p3683_p4 = scmp.lt.u32.totalorder %s3676_s21, %s4622_s8 }
  0x36   : > { %p3679_p1 = pnand %p3677_p11, %p4016_p12 }
  0x38   : > { %p3680_p2 = pneg %p3679_p1 }
  0x3a   : > { %p3685_p6 = pnand %p3683_p4, %p3680_p2 }
  0x3c   : > { %3688 = shalt.err (!%p3685_p6)
}
  0x3d   : > { %s3689_s13 = scalar_lea.vmem %s4006_s16, 4096  ;;  %p3697_p3 = scmp.lt.s32.totalorder %s4006_s16, %s4006_s16 }
  0x3e   : > { %p3690_p8 = scmp.ne.s32.totalorder %s4006_s16, %s3689_s13  ;;  %p3698_p5 = scmp.lt.s32.totalorder %s3689_s13, %s3689_s13 }
  0x40   : > { %p3692_p13 = pnand %p3690_p8, %p4016_p12  ;;  %p3699_p7 = por %p3698_p5, %p3697_p3 }
  0x42   : > { %p3693_p0 = pneg %p3692_p13 }
  0x44   : > { %p3700_p9 = pnand %p3699_p7, %p3693_p0 }
  0x46   : > { %3703 = shalt.err (!%p3700_p9)
}
  0x47   : > { %s3870_s11 = smov 256   ;;  %s3871_s9 = smov 16  }
  0x48   : > { %3373 = dma.hbm_to_vmem [thread:$0]  (!%p4002_p10), %s4622_s8, 4096, %s4006_s16, [#allocation11], %s3870_s11, %s3870_s11, %s3871_s9  }
  0x49   : > { %s3872_s18 = smov [#allocation9]   ;;  %s3704_s26 = scalar_lea.hbm %s4618_s4, 1024 }
  0x4a   : > { %s349_s20 = sshll.u32 %s3872_s18, 4  ;;  %p3705_p11 = scmp.ne.s32.totalorder %s4618_s4, %s3704_s26  ;;  %s350_s20 = int_to_ptr.vmem [resolvable:$true] %s349_s20 }
  0x4b   : > { %p3711_p4 = scmp.lt.u32.totalorder %s3704_s26, %s4618_s4 }
  0x4c   : > { %p3707_p1 = pnand %p3705_p11, %p4016_p12 }
  0x4e   : > { %p3708_p2 = pneg %p3707_p1 }
  0x50   : > { %p3713_p6 = pnand %p3711_p4, %p3708_p2 }
  0x52   : > { %3716 = shalt.err (!%p3713_p6)
}
  0x53   : > { %s3717_s16 = scalar_lea.vmem %s350_s20, 1024  ;;  %p3725_p3 = scmp.lt.s32.totalorder %s350_s20, %s350_s20 }
  0x54   : > { %p3718_p8 = scmp.ne.s32.totalorder %s350_s20, %s3717_s16  ;;  %p3726_p5 = scmp.lt.s32.totalorder %s3717_s16, %s3717_s16 }
  0x56   : > { %p3720_p13 = pnand %p3718_p8, %p4016_p12  ;;  %p3727_p7 = por %p3726_p5, %p3725_p3 }
  0x58   : > { %p3721_p0 = pneg %p3720_p13 }
  0x5a   : > { %p3728_p9 = pnand %p3727_p7, %p3721_p0 }
  0x5c   : > { %3731 = shalt.err (!%p3728_p9)
}
  0x5d   : > { %s3873_s11 = smov 64   ;;  %s3874_s9 = smov 4  }
  0x5e   : > { %3370 = dma.hbm_to_vmem [thread:$0]  (!%p4002_p10), %s4618_s4, 1024, %s350_s20, [#allocation8], %s3873_s11, %s3873_s11, %s3874_s9  }
  0x5f   : > { %s3875_s21 = smov [#allocation12]   ;;  %s3732_s26 = scalar_lea.hbm %s4624_s10, 4096 }
  0x60   : > { %s387_s18 = sshll.u32 %s3875_s21, 4  ;;  %p3733_p11 = scmp.ne.s32.totalorder %s4624_s10, %s3732_s26  ;;  %s388_s18 = int_to_ptr.vmem [resolvable:$true] %s387_s18 }
  0x61   : > { %p3739_p4 = scmp.lt.u32.totalorder %s3732_s26, %s4624_s10 }
  0x62   : > { %p3735_p1 = pnand %p3733_p11, %p4016_p12 }
  0x64   : > { %p3736_p2 = pneg %p3735_p1 }
  0x66   : > { %p3741_p6 = pnand %p3739_p4, %p3736_p2 }
  0x68   : > { %3744 = shalt.err (!%p3741_p6)
}
  0x69   : > { %s3745_s20 = scalar_lea.vmem %s388_s18, 4096  ;;  %p3753_p3 = scmp.lt.s32.totalorder %s388_s18, %s388_s18 }
  0x6a   : > { %p3746_p8 = scmp.ne.s32.totalorder %s388_s18, %s3745_s20  ;;  %p3754_p5 = scmp.lt.s32.totalorder %s3745_s20, %s3745_s20 }
  0x6c   : > { %p3748_p13 = pnand %p3746_p8, %p4016_p12  ;;  %p3755_p7 = por %p3754_p5, %p3753_p3 }
  0x6e   : > { %p3749_p0 = pneg %p3748_p13 }
  0x70   : > { %p3756_p9 = pnand %p3755_p7, %p3749_p0 }
  0x72   : > { %3759 = shalt.err (!%p3756_p9)
}
  0x73   : > { %3376 = dma.hbm_to_vmem [thread:$0]  (!%p4002_p10), %s4624_s10, 4096, %s388_s18, [#allocation11], %s3873_s11, %s3873_s11, %s3874_s9  }
  0x74   : > { %s4092_s30 = sadd.s32 1, %s3864_s24   ;;  %s37_s21 = sadd.s32 1, %s3860_s23 }
  0x75   : > { %s34_s14 = ssub.s32 %s3864_s24, %s4092_s30  ;;  %p44_p12 = scmp.ne.s32.totalorder %s3860_s23, %s3856_s22 }
  0x76   : > { %p35_p11 = scmp.eq.s32.totalorder %s34_s14, 0  ;;  %p45_p1 = scmp.eq.s32.totalorder %s3864_s24, 0 }
  0x77   : > { %p4645_p2 = scmp.eq.s32.totalorder %s3975_s25, 3  ;;  %p3389_p6 = scmp.lt.s32.totalorder %s3864_s24, 4 }
  0x78   : > { %s4108_s19 = scalar_select %p35_p11, %s3860_s23, %s37_s21  }
  0x79   : > { %p4102_p4 = por %p4645_p2, %p44_p12  ;;  %p46_p8 = por %p45_p1, %p44_p12 }
  0x7a   : > { %s404_s26 = sand.u32 1, %s3860_s23   ;;  %s3098_s11 = sshll.u32 %s3864_s24, 9 }
  0x7b   : > { %s2965_s15 = sshll.u32 %s404_s26, 5  ;;  %s4115_s17 = scalar_lea.hbm %s4614_s0, %s3098_s11 }
  0x7c   : > { %s408_s13 = scalar_lea.vmem [#allocation4], %s2965_s15  ;;  %p4119_p10 = pnand %p3389_p6, %p46_p8 }
  0x7d   : > { %s415_s16 = sshll.u32 %s408_s13, 4  ;;  %s4123_s3 = scalar_lea.sflag [#allocation5], %s404_s26  ;;  %s4117_s16 = int_to_ptr.vmem [resolvable:$true] %s415_s16 }
  0x7e   : > { %s3760_s12 = scalar_lea.hbm %s4115_s17, 512  ;;  %p3762_p0 = pneg %p4119_p10 }
  0x7f   : > { %p3761_p13 = scmp.ne.s32.totalorder %s4115_s17, %s3760_s12  ;;  %s3765_s15 = scalar_lea.hbm %s4614_s0, 2048 }
  0x80   : > { %p3766_p7 = scmp.lt.u32.totalorder %s4115_s17, %s4614_s0  ;;  %p3767_p9 = scmp.lt.u32.totalorder %s3765_s15, %s3760_s12 }
  0x81   : > { %p3763_p3 = pnand %p3762_p0, %p3761_p13  ;;  %p3769_p11 = scmp.lt.u32.totalorder %s3760_s12, %s4115_s17 }
  0x82   : > { %p3768_p12 = por %p3767_p9, %p3766_p7 }
  0x83   : > { %p3764_p5 = pneg %p3763_p3 }
  0x84   : > { %p3770_p1 = por %p3769_p11, %p3768_p12 }
  0x86   : > { %p3771_p2 = pnand %p3770_p1, %p3764_p5 }
  0x88   : > { %3774 = shalt.err (!%p3771_p2)
}
  0x89   : > { %s3775_s26 = scalar_lea.vmem %s4117_s16, 512  ;;  %s3876_s18 = smov [#allocation4]  }
  0x8a   : > { %p3776_p6 = scmp.ne.s32.totalorder %s4117_s16, %s3775_s26  ;;  %s3780_s13 = sshll.u32 %s3876_s18, 4  ;;  %s3781_s13 = int_to_ptr.vmem [resolvable:$false] %s3780_s13 }
  0x8b   : > { %s3782_s21 = scalar_lea.vmem %s3781_s13, 1024  ;;  %p3783_p3 = scmp.lt.s32.totalorder %s4117_s16, %s3781_s13 }
  0x8c   : > { %p3778_p8 = pnand %p3776_p6, %p3762_p0  ;;  %p3784_p7 = scmp.lt.s32.totalorder %s3782_s21, %s3775_s26 }
  0x8e   : > { %p3779_p13 = pneg %p3778_p8  ;;  %p3785_p9 = por %p3784_p7, %p3783_p3 }
  0x90   : > { %p3786_p12 = pnand %p3785_p9, %p3779_p13 }
  0x92   : > { %3789 = shalt.err (!%p3786_p12)
}
  0x93   : > { %s3877_s12 = smov 128   ;;  %s3878_s14 = smov 8  }
  0x94   : > { %3380 = dma.hbm_to_vmem [thread:$0]  (!%p4119_p10), %s4115_s17, 512, %s4117_s16, %s4123_s3, %s3877_s12, %s3877_s12, %s3878_s14  }
  0x95   : > { %p4648_p0 = scmp.ne.s32.totalorder %s4641_s29, 0 }
  0x96   : > { %s4154_s15 = sand.u32 (!%p4648_p0), 1, %s3856_s22   ;;  %p4649_p5 = scmp.ne.s32.totalorder (!%p4648_p0), %s4638_s27, 0 }
  0x97   : > { %427 = sbr.rel (%p4648_p0) target bundleno = 2779 (0xadb), region = 68  ;;  %s2969_s11 = sshll.u32 (!%p4648_p0), %s4154_s15, 5 }
  0x98   : > { %s430_s9 = scalar_lea.sflag (!%p4648_p0), [#allocation5], %s4154_s15  ;;  %s4160_s26 = scalar_lea.vmem (!%p4648_p0), [#allocation4], %s2969_s11 }
  0x9e   : > { %3835 = dma.done.wait (%p4649_p5), %s430_s9, 512  }
  0x9f   : > { %3837 = vsyncadd (%p4649_p5), %s430_s9, 4294966784  ;;  %p4650_p10 = scmp.eq.s32.totalorder %s3975_s25, 0 }
  0xa1   : > { %3839 = dma.done.wait (%p4650_p10), [#allocation8], 4096   ;;  %p4651_p11 = pmov %p4650_p10 }
  0xa2   : > { %p4652_p1 = pmov %p4650_p10 }
  0xa3   : > { %3841 = vsyncadd (%p4651_p11), [#allocation8], 4294963200 }
  0xa4   : > { %3843 = dma.done.wait (%p4652_p1), [#allocation11], 8192   ;;  %p4653_p2 = pmov %p4652_p1 }
  0xa5   : > { %v493_v0 = vld [vmem:[%s4160_s26] sm:$0xff]  ;;  %v495_v1 = vld [vmem:[%s4160_s26 + $0x10] sm:$0xff]  ;;  %v494_v2 = vld [vmem:[%s4160_s26 + $0x8] sm:$0xff]  ;;  %v3879_v39 = vmov 0   ;;  %vm3881_vm0 = vmmov 0   ;;  %vm852_vm1 = vcmask 261120  }
  0xa6   : > { %3845 = vsyncadd (%p4653_p2), [#allocation11], 4294959104  ;;  %499 = vadd.xlane.f32.xlu0 %v493_v0  ;;  %503 = vadd.xlane.f32.xlu1 %v495_v1  ;;  %v496_v3 = vld [vmem:[%s4160_s26 + $0x18] sm:$0xff]  ;;  %v3448_v4 = vld [vmem:[#allocation7 + $0x4] ss:$12 sps:$4 sm:$0xff]   ;;  %s3882_s20 = smov 96  }
  0xa7   : > { %v3450_v5 = vld [vmem:[#allocation7] ss:$12 sps:$4 sm:$0xff]   ;;  %v3451_v6 = vld [vmem:[#allocation7 + $0x1c] ss:$12 sps:$4 sm:$0xff]   ;;  %726 = vmatprep.subr.bf16.mxu0 %v3448_v4  ;;  %v3454_v24 = vld [vmem:[#allocation7 + $0x18] ss:$12 sps:$4 sm:$0xff]   ;;  %758 = vmatprep.mubr.bf16.mxu0 %v3879_v39 }
  0xa8   : > { %v3453_v7 = vld [vmem:[#allocation7 + $0x8] ss:$12 sps:$4 sm:$0xff]   ;;  %727 = vmatpush1.bf16.msra.mxu0 %v3450_v5  ;;  %v3457_v26 = vld [vmem:[#allocation7 + $0x20] ss:$12 sps:$4 sm:$0xff]   ;;  %v3458_v27 = vld [vmem:[#allocation7 + $0x30] ss:$12 sps:$4 sm:$0xff]  }
  0xa9   : > { %3208 = vmatprep.subr.bf16.mxu1 %v3453_v7  ;;  %728 = vmatprep.subr.bf16.mxu0 %v3451_v6  ;;  %v3455_v25 = vld [vmem:[#allocation7 + $0x34] ss:$12 sps:$4 sm:$0xff]   ;;  %v3459_v28 = vld [vmem:[#allocation7 + $0x4c] ss:$12 sps:$4 sm:$0xff]   ;;  %v3463_v31 = vld [vmem:[#allocation7 + $0x64] ss:$12 sps:$4 sm:$0xff]  }
  0xaa   : > { %501 = vadd.xlane.f32.xlu0 %v494_v2  ;;  %505 = vadd.xlane.f32.xlu1 %v496_v3  ;;  %v3461_v29 = vld [vmem:[#allocation7 + $0x38] ss:$12 sps:$4 sm:$0xff]   ;;  %v3462_v30 = vld [vmem:[#allocation7 + $0x48] ss:$12 sps:$4 sm:$0xff]   ;;  %v3465_v32 = vld [vmem:[#allocation7 + $0x50] ss:$12 sps:$4 sm:$0xff]  }
  0xab   : > { %3209 = vmatpush3.bf16.msra.mxu1 %v3453_v7  ;;  %v3466_v33 = vld [vmem:[#allocation7 + $0x60] ss:$12 sps:$4 sm:$0xff]   ;;  %v3467_v34 = vld [vmem:[#allocation7 + $0x7c] ss:$12 sps:$4 sm:$0xff]   ;;  %v3470_v36 = vld [vmem:[#allocation7 + $0x78] ss:$12 sps:$4 sm:$0xff]  }
  0xac   : > { %729 = vmatpush1.bf16.msra.mxu0 %v3454_v24  ;;  %3210 = vmatprep.subr.bf16.mxu1 %v3457_v26  ;;  %v3469_v35 = vld [vmem:[#allocation7 + $0x68] ss:$12 sps:$4 sm:$0xff]   ;;  %v3473_v38 = vld [vmem:[#allocation7 + $0x80] ss:$12 sps:$4 sm:$0xff]   ;;  %v3474_v40 = vld [vmem:[#allocation7 + $0x90] ss:$12 sps:$4 sm:$0xff]  }
  0xad   : > { %730 = vmatprep.subr.bf16.mxu0 %v3455_v25  ;;  %v3471_v37 = vld [vmem:[#allocation7 + $0x94] ss:$12 sps:$4 sm:$0xff]   ;;  %v3475_v41 = vld [vmem:[#allocation7 + $0xac] ss:$12 sps:$4 sm:$0xff]   ;;  %v3479_v44 = vld [vmem:[#allocation7 + $0xb0] ss:$12 sps:$4 sm:$0xff]  }
  0xae   : > { %v3477_v42 = vld [vmem:[#allocation7 + $0x98] ss:$12 sps:$4 sm:$0xff]   ;;  %v3478_v43 = vld [vmem:[#allocation7 + $0xa8] ss:$12 sps:$4 sm:$0xff]   ;;  %v2975_v59 = vld [vmem:[%s4615_s1] ss:$0 sm:$0xff] }
  0xaf   : > { %3211 = vmatpush3.bf16.msra.mxu1 %v3457_v26  ;;  %s3883_s3 = smov 64   ;;  %s3884_s18 = smov 32   ;;  %vm904_vm4 = vcmask 130048   ;;  %vm1110_vm5 = vcmask 523520   ;;  %vm1248_vm6 = vcmask 785920   ;;  %vm1386_vm7 = vcmask 1048320  }
  0xb0   : > { %731 = vmatpush1.bf16.msra.mxu0 %v3458_v27  ;;  %3212 = vmatprep.subr.bf16.mxu1 %v3461_v29  ;;  %s4654_s17 = sld [smem:[#allocation21_spill]]  ;;  %s4656_s14 = sld [smem:[#allocation23_spill]] }
  0xb1   : > { %732 = vmatprep.subr.bf16.mxu0 %v3459_v28 }
  0xb3   : > { %3213 = vmatpush3.bf16.msra.mxu1 %v3461_v29 }
  0xb4   : > { %733 = vmatpush1.bf16.msra.mxu0 %v3462_v30  ;;  %3214 = vmatprep.subr.bf16.mxu1 %v3465_v32 }
  0xb5   : > { %734 = vmatprep.subr.bf16.mxu0 %v3463_v31 }
  0xb7   : > { %3215 = vmatpush3.bf16.msra.mxu1 %v3465_v32 }
  0xb8   : > { %735 = vmatpush1.bf16.msra.mxu0 %v3466_v33  ;;  %3216 = vmatprep.subr.bf16.mxu1 %v3469_v35 }
  0xb9   : > { %736 = vmatprep.subr.bf16.mxu0 %v3467_v34 }
  0xbb   : > { %3217 = vmatpush3.bf16.msra.mxu1 %v3469_v35 }
  0xbc   : > { %737 = vmatpush1.bf16.msra.mxu0 %v3470_v36  ;;  %3218 = vmatprep.subr.bf16.mxu1 %v3473_v38 }
  0xbd   : > { %738 = vmatprep.subr.bf16.mxu0 %v3471_v37 }
  0xbf   : > { %3219 = vmatpush3.bf16.msra.mxu1 %v3473_v38 }
  0xc0   : > { %739 = vmatpush1.bf16.msra.mxu0 %v3474_v40  ;;  %3220 = vmatprep.subr.bf16.mxu1 %v3477_v42 }
  0xc1   : > { %740 = vmatprep.subr.bf16.mxu0 %v3475_v41 }
  0xc3   : > { %3221 = vmatpush3.bf16.msra.mxu1 %v3477_v42 }
  0xc4   : > { %741 = vmatpush1.bf16.msra.mxu0 %v3478_v43  ;;  %3222 = vmatprep.subr.bf16.mxu1 %v3479_v44 }
  0xc7   : > { %3223 = vmatpush3.bf16.msra.mxu1 %v3479_v44 }
 0x133   : > { %v500_v8 = vpop.xlane.xlu0 %499  ;;  %v504_v9 = vpop.xlane.xlu1 %503 }
 0x134   : > { %v508_v10 = vmul.f32 0.0078125, %v500_v8  ;;  %v510_v11 = vmul.f32 0.0078125, %v504_v9 }
 0x136   : > { %v4178_v12 = vsub.f32 %v493_v0, %v508_v10  ;;  %v4180_v13 = vsub.f32 %v495_v1, %v510_v11  ;;  %v2976_v0 = vld [vmem:[%s4616_s2] ss:$0 sm:$0xff] }
 0x137   : > { %v502_v14 = vpop.xlane.xlu0 %501  ;;  %v506_v15 = vpop.xlane.xlu1 %505 }
 0x138   : > { %v509_v16 = vmul.f32 0.0078125, %v502_v14  ;;  %v516_v17 = vmul.f32 %v4178_v12, %v4178_v12  ;;  %v511_v18 = vmul.f32 0.0078125, %v506_v15  ;;  %v518_v21 = vmul.f32 %v4180_v13, %v4180_v13 }
 0x139   : > { %v3880_v14 = vmov 0.0  }
 0x13a   : > { %v4184_v19 = vsub.f32 %v494_v2, %v509_v16  ;;  %520 = vadd.xlane.f32.xlu0 %v516_v17  ;;  %v4186_v20 = vsub.f32 %v496_v3, %v511_v18  ;;  %3228 = vmatprep.subr.bf16.mxu0 %v3880_v14 }
 0x13b   : > { %3240 = vmatprep.subr.bf16.mxu1 %v3880_v14 }
 0x13c   : > { %v517_v22 = vmul.f32 %v4184_v19, %v4184_v19  ;;  %v519_v23 = vmul.f32 %v4186_v20, %v4186_v20 }
 0x13e   : > { %524 = vadd.xlane.f32.xlu0 %v518_v21  ;;  %522 = vadd.xlane.f32.xlu1 %v517_v22 }
 0x142   : > { %526 = vadd.xlane.f32.xlu1 %v519_v23 }
 0x1c7   : > { %v521_v45 = vpop.xlane.xlu0 %520 }
 0x1c8   : > { %v528_v46 = vmul.f32 0.0078125, %v521_v45 }
 0x1ca   : > { %v532_v47 = vadd.f32 1e-05, %v528_v46 }
 0x1cb   : > { %v523_v48 = vpop.xlane.xlu1 %522  ;;  %v525_v49 = vpop.xlane.xlu0 %524 }
 0x1cc   : > { %3568 = vrsqrt.f32 %v532_v47  ;;  %v529_v50 = vmul.f32 0.0078125, %v523_v48  ;;  %v530_v51 = vmul.f32 0.0078125, %v525_v49 }
 0x1ce   : > { %v533_v52 = vadd.f32 1e-05, %v529_v50  ;;  %v534_v53 = vadd.f32 1e-05, %v530_v51 }
 0x1cf   : > { %v527_v54 = vpop.xlane.xlu1 %526 }
 0x1d0   : > { %3570 = vrsqrt.f32 %v533_v52  ;;  %v531_v55 = vmul.f32 0.0078125, %v527_v54 }
 0x1d1   : > { %3572 = vrsqrt.f32 %v534_v53  ;;  %v840_v53 = vlaneseq }
 0x1d2   : > { %v535_v56 = vadd.f32 1e-05, %v531_v55 }
 0x1d3   : > { %v4267_v54 = vshrl.u32 %v840_v53, 7  ;;  %v844_v55 = vand.u32 127, %v840_v53 }
 0x1d4   : > { %3574 = vrsqrt.f32 %v535_v56 }
 0x1d5   : > { %v842_v56 = vadd.s32 8, %v4267_v54  ;;  %vm845_vm2 = vcmp.le.s32.totalorder %v844_v55, %v4267_v54 }
 0x1d6   : > { %v3569_v57 = vpop.eup %3568 }
 0x1d7   : > { %v540_v58 = vmul.f32 %v3569_v57, %v4178_v12  ;;  %vm846_vm3 = vcmp.le.s32.totalorder %v844_v55, %v842_v56 }
 0x1d9   : > { %v550_v63 = vmul.f32 %v2975_v59, %v540_v58  ;;  %v3885_v58 = vmov -1e+30  }
 0x1da   : > { %v3571_v60 = vpop.eup %3570 }
 0x1db   : > { %v3573_v61 = vpop.eup %3572  ;;  %v541_v62 = vmul.f32 %v3571_v60, %v4184_v19  ;;  %v560_v4 = vadd.f32 %v2976_v0, %v550_v63  ;;  %v4273_v63 = vsel %vm846_vm3, 0.0, %v3885_v58 }
 0x1dc   : > { %v542_v1 = vmul.f32 %v3573_v61, %v4180_v13 }
 0x1dd   : > { %v551_v2 = vmul.f32 %v2975_v59, %v541_v62 }
 0x1de   : > { %v3575_v3 = vpop.eup %3574  ;;  %v552_v7 = vmul.f32 %v2975_v59, %v542_v1 }
 0x1df   : > { %v561_v5 = vadd.f32 %v2976_v0, %v551_v2  ;;  %v543_v6 = vmul.f32 %v3575_v3, %v4186_v20 }
 0x1e0   : > { %v562_v10 = vadd.f32 %v2976_v0, %v552_v7 }
 0x1e1   : > { %v564_v8 = vpack.c.bf16 %v561_v5, %v560_v4  ;;  %v553_v9 = vmul.f32 %v2975_v59, %v543_v6  ;;  %v4271_v59 = vsel %vm845_vm2, 0.0, %v3885_v58 }
 0x1e3   : > { %759 = vmatmul.mubr.bf16.vlgmr.msra.gmra.mrb[0].mxu0 %v564_v8  ;;  %3224 = vmatprep.mubr.bf16.mxu1 %v564_v8  ;;  %v563_v11 = vadd.f32 %v2976_v0, %v553_v9 }
 0x1e4   : > { %768 = vmatprep.mubr.bf16.mxu0 %v3879_v39 }
 0x1e5   : > { %v565_v12 = vpack.c.bf16 %v563_v11, %v562_v10 }
 0x1e7   : > { %3225 = vmatmul.mubr.bf16.vlgmr.msra.gmra.mrb[0].mxu1 %v565_v12 }
 0x1e8   : > { %3242 = vmatprep.mubr.msk.bf16.mxu1 %vm3881_vm0, %v3880_v14 }
 0x1eb   : > { %769 = vmatmul.mubr.bf16.gmra.mrb[4].mxu0 %v565_v12 }
 0x1ec   : > { %3230 = vmatprep.mubr.msk.bf16.mxu0 %vm3881_vm0, %v3880_v14 }
 0x2b6   : > { %v760_v13 = vpop.f32.mrb[0].mxu0 }
 0x2b7   : > { %v762_v15 = vpop.f32.mrb[1].mxu0 }
 0x2b8   : > { %v764_v16 = vpop.f32.mrb[2].mxu0 }
 0x2b9   : > { %v828_v17 = vpack.c.bf16 %v764_v16, %v760_v13  ;;  %v766_v18 = vpop.f32.mrb[3].mxu0 }
 0x2ba   : > { %v829_v19 = vpack.c.bf16 %v766_v18, %v762_v15  ;;  %v3226_v20 = vpop.f32.mrb[0].mxu1 }
 0x2bb   : > { %978 = vrot.lane.b32.xlu1 %v828_v17, %s3882_s20  ;;  %v813_v21 = vpop.f32.mrb[1].mxu1 }
 0x2bc   : > { %981 = vrot.lane.b32.xlu0 %v829_v19, %s3882_s20  ;;  %v3227_v22 = vpop.f32.mrb[2].mxu1  ;;  %v857_v23 = vsel %vm852_vm1, %v829_v19, 0 }
 0x2bd   : > { %v4215_v24 = vpack.c.bf16 %v3227_v22, %v3226_v20  ;;  %v816_v25 = vpop.f32.mrb[3].mxu1  ;;  %3229 = vmatpush3.bf16.xpose.msra.mxu0 %v857_v23 }
 0x2be   : > { %v4217_v26 = vpack.c.bf16 %v816_v25, %v813_v21  ;;  %v770_v27 = vpop.f32.mrb[4].mxu0  ;;  %3234 = vmatprep.subr.bf16.mxu0 %v3880_v14 }
 0x2bf   : > { %1119 = vrot.lane.b32.xlu1 %v829_v19, %s3883_s3  ;;  %v772_v28 = vpop.f32.mrb[5].mxu0 }
 0x2c0   : > { %1257 = vrot.lane.b32.xlu0 %v829_v19, %s3884_s18  ;;  %v774_v29 = vpop.f32.mrb[6].mxu0 }
 0x2c1   : > { %v831_v30 = vpack.c.bf16 %v774_v29, %v770_v27  ;;  %v776_v31 = vpop.f32.mrb[7].mxu0 }
 0x2c2   : > { %v832_v32 = vpack.c.bf16 %v776_v31, %v772_v28 }
 0x2c3   : > { %1116 = vrot.lane.b32.xlu1 %v828_v17, %s3883_s3 }
 0x2c4   : > { %3231 = vmatmul.mubr.msk.bf16.vlgmr.msra.gmra.mrb[8].mxu0 %vm852_vm1, %v828_v17  ;;  %1518 = vrot.lane.b32.xlu0 %v832_v32, %s3882_s20  ;;  %v1395_v43 = vsel %vm852_vm1, %v832_v32, 0 }
 0x2c5   : > { %3235 = vmatpush3.bf16.msra.mxu0 %v4217_v26  ;;  %3236 = vmatprep.mubr.msk.bf16.mxu0 %vm3881_vm0, %v3880_v14 }
 0x2c6   : > { %3246 = vmatprep.subr.bf16.mxu0 %v3880_v14 }
 0x2c7   : > { %1254 = vrot.lane.b32.xlu1 %v828_v17, %s3884_s18 }
 0x2c8   : > { %1655 = vrot.lane.b32.xlu0 %v832_v32, %s3883_s3 }
 0x2cb   : > { %1515 = vrot.lane.b32.xlu1 %v831_v30, %s3882_s20 }
 0x2cc   : > { %1792 = vrot.lane.b32.xlu0 %v832_v32, %s3884_s18 }
 0x2cf   : > { %1652 = vrot.lane.b32.xlu1 %v831_v30, %s3883_s3 }
 0x2d3   : > { %1789 = vrot.lane.b32.xlu1 %v831_v30, %s3884_s18 }
 0x32d   : > { %v979_v33 = vpop.permute.xlu1 %978 }
 0x32e   : > { %v982_v34 = vpop.permute.xlu0 %981 }
 0x32f   : > { %v987_v35 = vsel %vm852_vm1, %v982_v34, 0 }
 0x330   : > { %3241 = vmatpush3.bf16.xpose.msra.mxu1 %v987_v35 }
 0x331   : > { %3252 = vmatprep.subr.bf16.mxu1 %v3880_v14  ;;  %v1120_v36 = vpop.permute.xlu1 %1119 }
 0x332   : > { %v1125_v37 = vsel %vm852_vm1, %v1120_v36, 0  ;;  %v1258_v38 = vpop.permute.xlu0 %1257 }
 0x333   : > { %v1263_v41 = vsel %vm852_vm1, %v1258_v38, 0 }
 0x335   : > { %v1117_v40 = vpop.permute.xlu1 %1116 }
 0x336   : > { %v1519_v44 = vpop.permute.xlu0 %1518 }
 0x337   : > { %3243 = vmatmul.mubr.msk.bf16.vlgmr.msra.gmra.mrb[4].mxu1 %vm852_vm1, %v979_v33  ;;  %v1524_v45 = vsel %vm852_vm1, %v1519_v44, 0 }
 0x338   : > { %3253 = vmatpush3.bf16.xpose.msra.mxu1 %v1125_v37  ;;  %3254 = vmatprep.mubr.msk.bf16.mxu1 %vm3881_vm0, %v3880_v14 }
 0x339   : > { %3264 = vmatprep.subr.bf16.mxu1 %v3880_v14  ;;  %v1255_v42 = vpop.permute.xlu1 %1254 }
 0x33a   : > { %v1656_v46 = vpop.permute.xlu0 %1655 }
 0x33b   : > { %v1661_v48 = vsel %vm852_vm1, %v1656_v46, 0 }
 0x33d   : > { %v1516_v47 = vpop.permute.xlu1 %1515 }
 0x33e   : > { %v1793_v49 = vpop.permute.xlu0 %1792 }
 0x33f   : > { %3255 = vmatmul.mubr.msk.bf16.vlgmr.msra.gmra.mrb[8].mxu1 %vm852_vm1, %v1117_v40  ;;  %v1798_v51 = vsel %vm852_vm1, %v1793_v49, 0 }
 0x340   : > { %3265 = vmatpush3.bf16.xpose.msra.mxu1 %v1263_v41  ;;  %3266 = vmatprep.mubr.msk.bf16.mxu1 %vm3881_vm0, %v3880_v14 }
 0x341   : > { %3276 = vmatprep.subr.bf16.mxu1 %v3880_v14  ;;  %v1653_v50 = vpop.permute.xlu1 %1652 }
 0x345   : > { %v1790_v52 = vpop.permute.xlu1 %1789 }
 0x347   : > { %3267 = vmatmul.mubr.msk.bf16.vlgmr.msra.gmra.mrb[12].mxu1 %vm852_vm1, %v1255_v42 }
 0x348   : > { %3277 = vmatpush3.bf16.xpose.msra.mxu1 %v1395_v43  ;;  %3278 = vmatprep.mubr.msk.bf16.mxu1 %vm3881_vm0, %v3880_v14 }
 0x349   : > { %3288 = vmatprep.subr.bf16.mxu1 %v3880_v14 }
 0x34f   : > { %3279 = vmatmul.mubr.msk.bf16.vlgmr.msra.gmra.mrb[16].mxu1 %vm852_vm1, %v831_v30 }
 0x350   : > { %3289 = vmatpush3.bf16.xpose.msra.mxu1 %v1524_v45  ;;  %3290 = vmatprep.mubr.msk.bf16.mxu1 %vm3881_vm0, %v3880_v14 }
 0x351   : > { %3300 = vmatprep.subr.bf16.mxu1 %v3880_v14 }
 0x357   : > { %3291 = vmatmul.mubr.msk.bf16.vlgmr.msra.gmra.mrb[20].mxu1 %vm852_vm1, %v1516_v47 }
 0x358   : > { %3301 = vmatpush3.bf16.xpose.msra.mxu1 %v1661_v48  ;;  %3302 = vmatprep.mubr.msk.bf16.mxu1 %vm3881_vm0, %v3880_v14 }
 0x359   : > { %3312 = vmatprep.subr.bf16.mxu1 %v3880_v14 }
 0x35f   : > { %3303 = vmatmul.mubr.msk.bf16.vlgmr.msra.gmra.mrb[24].mxu1 %vm852_vm1, %v1653_v50 }
 0x360   : > { %3313 = vmatpush3.bf16.xpose.msra.mxu1 %v1798_v51  ;;  %3314 = vmatprep.mubr.msk.bf16.mxu1 %vm3881_vm0, %v3880_v14 }
 0x367   : > { %3315 = vmatmul.mubr.msk.bf16.vlgmr.msra.gmra.mrb[28].mxu1 %vm852_vm1, %v1790_v52 }
 0x397   : > { %v893_v57 = vpop.f32.mrb[8].mxu0 }
 0x398   : > { %v900_v60 = vmul.f32 0.088388346, %v893_v57  ;;  %v3232_v61 = vpop.f32.mrb[9].mxu0 }
 0x399   : > { %v896_v62 = vpop.f32.mrb[10].mxu0 }
 0x39a   : > { %v901_v0 = vmul.f32 0.088388346, %v896_v62  ;;  %v3233_v1 = vpop.f32.mrb[11].mxu0  ;;  %v902_v2 = vadd.f32 %v900_v60, %v4271_v59 }
 0x39c   : > { %v905_v3 = vsel %vm904_vm4, %v902_v2, -inf  ;;  %v4278_v4 = vadd.f32 %v901_v0, %v4273_v63 }
 0x39d   : > { %906 = vmax.xlane.f32.xlu0 %v905_v3 }
 0x39e   : > { %v908_v5 = vsel %vm904_vm4, %v4278_v4, -inf }
 0x39f   : > { %909 = vmax.xlane.f32.xlu1 %v908_v5 }
 0x40a   : > { %v1023_v6 = vpop.f32.mrb[4].mxu1 }
 0x40b   : > { %v1030_v7 = vmul.f32 0.088388346, %v1023_v6  ;;  %v3244_v8 = vpop.f32.mrb[5].mxu1 }
 0x40c   : > { %v1026_v9 = vpop.f32.mrb[6].mxu1 }
 0x40d   : > { %v1031_v10 = vmul.f32 0.088388346, %v1026_v9  ;;  %v3245_v11 = vpop.f32.mrb[7].mxu1  ;;  %v4283_v12 = vadd.f32 %v1030_v7, %v4271_v59 }
 0x40f   : > { %v1034_v13 = vsel %vm904_vm4, %v4283_v12, -inf  ;;  %v4288_v15 = vadd.f32 %v1031_v10, %v4273_v63 }
 0x410   : > { %1035 = vmax.xlane.f32.xlu0 %v1034_v13 }
 0x411   : > { %v1037_v19 = vsel %vm904_vm4, %v4288_v15, -inf }
 0x412   : > { %v1161_v16 = vpop.f32.mrb[8].mxu1 }
 0x413   : > { %v1168_v17 = vmul.f32 0.088388346, %v1161_v16  ;;  %v3256_v18 = vpop.f32.mrb[9].mxu1 }
 0x414   : > { %1038 = vmax.xlane.f32.xlu0 %v1037_v19  ;;  %v1164_v20 = vpop.f32.mrb[10].mxu1 }
 0x415   : > { %v1169_v21 = vmul.f32 0.088388346, %v1164_v20  ;;  %v3257_v22 = vpop.f32.mrb[11].mxu1  ;;  %v4293_v23 = vadd.f32 %v1168_v17, %v4271_v59 }
 0x417   : > { %v1172_v25 = vsel %vm904_vm4, %v4293_v23, -inf  ;;  %v4298_v27 = vadd.f32 %v1169_v21, %v4273_v63 }
 0x418   : > { %1173 = vmax.xlane.f32.xlu0 %v1172_v25 }
 0x419   : > { %v1175_v28 = vsel %vm904_vm4, %v4298_v27, -inf }
 0x41a   : > { %1176 = vmax.xlane.f32.xlu1 %v1175_v28  ;;  %v1299_v29 = vpop.f32.mrb[12].mxu1 }
 0x41b   : > { %v1306_v30 = vmul.f32 0.088388346, %v1299_v29  ;;  %v3268_v31 = vpop.f32.mrb[13].mxu1 }
 0x41c   : > { %v1302_v32 = vpop.f32.mrb[14].mxu1 }
 0x41d   : > { %v1307_v33 = vmul.f32 0.088388346, %v1302_v32  ;;  %v3269_v34 = vpop.f32.mrb[15].mxu1  ;;  %v4303_v35 = vadd.f32 %v1306_v30, %v4271_v59 }
 0x41f   : > { %v1310_v36 = vsel %vm904_vm4, %v4303_v35, -inf  ;;  %v4308_v37 = vadd.f32 %v1307_v33, %v4273_v63 }
 0x420   : > { %1311 = vmax.xlane.f32.xlu0 %v1310_v36 }
 0x421   : > { %v1313_v38 = vsel %vm904_vm4, %v4308_v37, -inf }
 0x422   : > { %1314 = vmax.xlane.f32.xlu1 %v1313_v38  ;;  %v1431_v40 = vpop.f32.mrb[16].mxu1 }
 0x423   : > { %v1438_v41 = vmul.f32 0.088388346, %v1431_v40  ;;  %v3280_v42 = vpop.f32.mrb[17].mxu1 }
 0x424   : > { %v1434_v43 = vpop.f32.mrb[18].mxu1 }
 0x425   : > { %v1439_v44 = vmul.f32 0.088388346, %v1434_v43  ;;  %v3281_v45 = vpop.f32.mrb[19].mxu1  ;;  %v4313_v46 = vadd.f32 %v1438_v41, %v4271_v59 }
 0x427   : > { %v1442_v47 = vsel %vm904_vm4, %v4313_v46, -inf  ;;  %v4318_v48 = vadd.f32 %v1439_v44, %v4273_v63 }
 0x428   : > { %1443 = vmax.xlane.f32.xlu0 %v1442_v47 }
 0x429   : > { %v1445_v49 = vsel %vm904_vm4, %v4318_v48, -inf }
 0x42a   : > { %1446 = vmax.xlane.f32.xlu1 %v1445_v49  ;;  %v1560_v50 = vpop.f32.mrb[20].mxu1  ;;  %v907_v51 = vpop.xlane.xlu0 %906 }
 0x42b   : > { %v1567_v52 = vmul.f32 0.088388346, %v1560_v50  ;;  %v911_v53 = vsub.f32 %v902_v2, %v907_v51  ;;  %v3292_v55 = vpop.f32.mrb[21].mxu1 }
 0x42c   : > { %v910_v56 = vpop.xlane.xlu1 %909  ;;  %v1563_v57 = vpop.f32.mrb[22].mxu1 }
 0x42d   : > { %v913_v58 = vmul.f32 1.442695, %v911_v53  ;;  %v912_v60 = vsub.f32 %v4278_v4, %v910_v56  ;;  %v1568_v61 = vmul.f32 0.088388346, %v1563_v57  ;;  %v3293_v62 = vpop.f32.mrb[23].mxu1  ;;  %v4324_v0 = vadd.f32 %v1567_v52, %v4271_v59 }
 0x42f   : > { %3576 = vpow2.f32 %v913_v58  ;;  %v915_v1 = vmul.f32 1.442695, %v912_v60  ;;  %v1571_v3 = vsel %vm904_vm4, %v4324_v0, -inf  ;;  %v4329_v5 = vadd.f32 %v1568_v61, %v4273_v63 }
 0x430   : > { %1572 = vmax.xlane.f32.xlu0 %v1571_v3 }
 0x431   : > { %3578 = vpow2.f32 %v915_v1  ;;  %v1574_v2 = vsel %vm904_vm4, %v4329_v5, -inf }
 0x432   : > { %1575 = vmax.xlane.f32.xlu1 %v1574_v2  ;;  %v1697_v4 = vpop.f32.mrb[24].mxu1 }
 0x433   : > { %v1704_v6 = vmul.f32 0.088388346, %v1697_v4  ;;  %v3304_v7 = vpop.f32.mrb[25].mxu1 }
 0x434   : > { %v1700_v8 = vpop.f32.mrb[26].mxu1 }
 0x435   : > { %v1705_v9 = vmul.f32 0.088388346, %v1700_v8  ;;  %v3305_v10 = vpop.f32.mrb[27].mxu1  ;;  %v4334_v11 = vadd.f32 %v1704_v6, %v4271_v59 }
 0x437   : > { %v1708_v13 = vsel %vm904_vm4, %v4334_v11, -inf  ;;  %v4339_v16 = vadd.f32 %v1705_v9, %v4273_v63 }
 0x438   : > { %1709 = vmax.xlane.f32.xlu0 %v1708_v13 }
 0x439   : > { %v4341_v17 = vpop.eup %3576  ;;  %v1711_v18 = vsel %vm904_vm4, %v4339_v16, -inf }
 0x43a   : > { %1712 = vmax.xlane.f32.xlu1 %v1711_v18  ;;  %v1834_v19 = vpop.f32.mrb[28].mxu1  ;;  %v917_v20 = vsel %vm904_vm4, %v4341_v17, 0.0 }
 0x43b   : > { %v4347_v21 = vpop.eup %3578  ;;  %v1841_v22 = vmul.f32 0.088388346, %v1834_v19  ;;  %v3316_v25 = vpop.f32.mrb[29].mxu1 }
 0x43c   : > { %v1837_v28 = vpop.f32.mrb[30].mxu1  ;;  %918 = vadd.xlane.f32.xlu0 %v917_v20  ;;  %v920_v29 = vsel %vm904_vm4, %v4347_v21, 0.0 }
 0x43d   : > { %v1842_v30 = vmul.f32 0.088388346, %v1837_v28  ;;  %v3317_v31 = vpop.f32.mrb[31].mxu1  ;;  %v4352_v32 = vadd.f32 %v1841_v22, %v4271_v59 }
 0x43e   : > { %921 = vadd.xlane.f32.xlu1 %v920_v29 }
 0x43f   : > { %v1845_v33 = vsel %vm904_vm4, %v4352_v32, -inf  ;;  %v4357_v34 = vadd.f32 %v1842_v30, %v4273_v63 }
 0x440   : > { %1846 = vmax.xlane.f32.xlu0 %v1845_v33 }
 0x441   : > { %v1848_v36 = vsel %vm904_vm4, %v4357_v34, -inf }
 0x442   : > { %1849 = vmax.xlane.f32.xlu1 %v1848_v36 }
 0x453   : > { %1196 = vrot.lane.b32.xlu1 %v4217_v26, %s3883_s3 }
 0x456   : > { %1058 = vrot.lane.b32.xlu0 %v4217_v26, %s3882_s20 }
 0x49d   : > { %v1036_v59 = vpop.xlane.xlu0 %1035 }
 0x49e   : > { %v1040_v38 = vsub.f32 %v4283_v12, %v1036_v59 }
 0x4a0   : > { %v1042_v40 = vmul.f32 1.442695, %v1040_v38 }
 0x4a1   : > { %v1039_v41 = vpop.xlane.xlu0 %1038 }
 0x4a2   : > { %3580 = vpow2.f32 %v1042_v40  ;;  %v1041_v63 = vsub.f32 %v4288_v15, %v1039_v41 }
 0x4a4   : > { %v1044_v42 = vmul.f32 1.442695, %v1041_v63 }
 0x4a5   : > { %v1174_v43 = vpop.xlane.xlu0 %1173 }
 0x4a6   : > { %3582 = vpow2.f32 %v1044_v42  ;;  %v1178_v44 = vsub.f32 %v4293_v23, %v1174_v43 }
 0x4a7   : > { %v1177_v45 = vpop.xlane.xlu1 %1176 }
 0x4a8   : > { %v1180_v47 = vmul.f32 1.442695, %v1178_v44  ;;  %v1179_v49 = vsub.f32 %v4298_v27, %v1177_v45 }
 0x4aa   : > { %3584 = vpow2.f32 %v1180_v47  ;;  %v1182_v50 = vmul.f32 1.442695, %v1179_v49 }
 0x4ac   : > { %v4369_v51 = vpop.eup %3580  ;;  %3586 = vpow2.f32 %v1182_v50 }
 0x4ad   : > { %v1312_v12 = vpop.xlane.xlu0 %1311  ;;  %v1046_v52 = vsel %vm904_vm4, %v4369_v51, 0.0 }
 0x4ae   : > { %v1316_v15 = vsub.f32 %v4303_v35, %v1312_v12  ;;  %1047 = vadd.xlane.f32.xlu0 %v1046_v52 }
 0x4af   : > { %v1315_v53 = vpop.xlane.xlu1 %1314 }
 0x4b0   : > { %v4374_v55 = vpop.eup %3582  ;;  %v1318_v23 = vmul.f32 1.442695, %v1316_v15  ;;  %v1317_v56 = vsub.f32 %v4308_v37, %v1315_v53 }
 0x4b1   : > { %v1049_v27 = vsel %vm904_vm4, %v4374_v55, 0.0 }
 0x4b2   : > { %3588 = vpow2.f32 %v1318_v23  ;;  %v1320_v57 = vmul.f32 1.442695, %v1317_v56  ;;  %1050 = vadd.xlane.f32.xlu1 %v1049_v27 }
 0x4b4   : > { %v4379_v58 = vpop.eup %3584  ;;  %3590 = vpow2.f32 %v1320_v57 }
 0x4b5   : > { %v1444_v60 = vpop.xlane.xlu0 %1443  ;;  %v1184_v35 = vsel %vm904_vm4, %v4379_v58, 0.0 }
 0x4b6   : > { %v4383_v61 = vpop.eup %3586  ;;  %v1448_v62 = vsub.f32 %v4313_v46, %v1444_v60  ;;  %1185 = vadd.xlane.f32.xlu0 %v1184_v35 }
 0x4b7   : > { %v1447_v1 = vpop.xlane.xlu1 %1446  ;;  %v1187_v37 = vsel %vm904_vm4, %v4383_v61, 0.0 }
 0x4b8   : > { %v1450_v3 = vmul.f32 1.442695, %v1448_v62  ;;  %v1449_v2 = vsub.f32 %v4318_v48, %v1447_v1  ;;  %1188 = vadd.xlane.f32.xlu1 %v1187_v37 }
 0x4ba   : > { %3592 = vpow2.f32 %v1450_v3  ;;  %v1452_v4 = vmul.f32 1.442695, %v1449_v2 }
 0x4bc   : > { %v4389_v6 = vpop.eup %3588  ;;  %3594 = vpow2.f32 %v1452_v4 }
 0x4bd   : > { %v1573_v7 = vpop.xlane.xlu0 %1572  ;;  %v1322_v8 = vsel %vm904_vm4, %v4389_v6, 0.0 }
 0x4be   : > { %v4393_v9 = vpop.eup %3590  ;;  %v1577_v46 = vsub.f32 %v4324_v0, %v1573_v7  ;;  %1323 = vadd.xlane.f32.xlu0 %v1322_v8 }
 0x4bf   : > { %v1576_v10 = vpop.xlane.xlu1 %1575  ;;  %v1325_v13 = vsel %vm904_vm4, %v4393_v9, 0.0 }
 0x4c0   : > { %v1579_v48 = vmul.f32 1.442695, %v1577_v46  ;;  %v1578_v18 = vsub.f32 %v4329_v5, %v1576_v10  ;;  %1326 = vadd.xlane.f32.xlu1 %v1325_v13 }
 0x4c2   : > { %3596 = vpow2.f32 %v1579_v48  ;;  %v1581_v19 = vmul.f32 1.442695, %v1578_v18 }
 0x4c4   : > { %v4399_v20 = vpop.eup %3592  ;;  %3598 = vpow2.f32 %v1581_v19 }
 0x4c5   : > { %v1710_v22 = vpop.xlane.xlu0 %1709  ;;  %v1454_v25 = vsel %vm904_vm4, %v4399_v20, 0.0 }
 0x4c6   : > { %v4403_v28 = vpop.eup %3594  ;;  %1455 = vadd.xlane.f32.xlu0 %v1454_v25  ;;  %v1714_v23 = vsub.f32 %v4334_v11, %v1710_v22 }
 0x4c7   : > { %v1713_v0 = vpop.xlane.xlu1 %1712  ;;  %v1457_v29 = vsel %vm904_vm4, %v4403_v28, 0.0 }
 0x4c8   : > { %v1715_v30 = vsub.f32 %v4339_v16, %v1713_v0  ;;  %1458 = vadd.xlane.f32.xlu1 %v1457_v29  ;;  %v1716_v56 = vmul.f32 1.442695, %v1714_v23 }
 0x4c9   : > { %v919_v5 = vpop.xlane.xlu0 %918 }
 0x4ca   : > { %v1718_v31 = vmul.f32 1.442695, %v1715_v30  ;;  %3600 = vrcp.f32 %v919_v5 }
 0x4cb   : > { %v922_v33 = vpop.xlane.xlu1 %921 }
 0x4cc   : > { %v4408_v36 = vpop.eup %3596  ;;  %3602 = vpow2.f32 %v1718_v31 }
 0x4cd   : > { %3604 = vrcp.f32 %v922_v33  ;;  %v1847_v59 = vpop.xlane.xlu0 %1846  ;;  %v1583_v38 = vsel %vm904_vm4, %v4408_v36, 0.0 }
 0x4ce   : > { %v4412_v40 = vpop.eup %3598  ;;  %v1851_v41 = vsub.f32 %v4352_v32, %v1847_v59  ;;  %1584 = vadd.xlane.f32.xlu1 %v1583_v38 }
 0x4cf   : > { %v1850_v63 = vpop.xlane.xlu1 %1849  ;;  %v1586_v43 = vsel %vm904_vm4, %v4412_v40, 0.0 }
 0x4d0   : > { %v1853_v16 = vmul.f32 1.442695, %v1851_v41  ;;  %v1852_v42 = vsub.f32 %v4357_v34, %v1850_v63 }
 0x4d1   : > { %v1059_v15 = vpop.permute.xlu0 %1058 }
 0x4d2   : > { %3606 = vpow2.f32 %v1853_v16  ;;  %v1855_v44 = vmul.f32 1.442695, %v1852_v42  ;;  %1587 = vadd.xlane.f32.xlu1 %v1586_v43 }
 0x4d3   : > { %v1197_v57 = vpop.permute.xlu1 %1196 }
 0x4d4   : > { %3608 = vpow2.f32 %v1855_v44  ;;  %v3601_v45 = vpop.eup %3600 }
 0x4d5   : > { %v925_v32 = vmul.f32 %v3601_v45, %v4341_v17  ;;  %3610 = vpow2.f32 %v1716_v56 }
 0x4d6   : > { %v4418_v47 = vpop.eup %3602 }
 0x4d7   : > { %v3605_v49 = vpop.eup %3604  ;;  %v1723_v50 = vsel %vm904_vm4, %v4418_v47, 0.0 }
 0x4d8   : > { %v926_v12 = vmul.f32 %v3605_v49, %v4347_v21  ;;  %1724 = vadd.xlane.f32.xlu1 %v1723_v50 }
 0x4da   : > { %v927_v34 = vpack.c.bf16 %v926_v12, %v925_v32 }
 0x4dc   : > { %v4424_v52 = vpop.eup %3606  ;;  %3237 = vmatmul.mubr.msk.bf16.vlgmr.msra.gmra.mrb[12].mxu0 %vm904_vm4, %v927_v34  ;;  %1334 = vrot.lane.b32.xlu0 %v4217_v26, %s3884_s18 }
 0x4dd   : > { %3247 = vmatpush3.bf16.msra.mxu0 %v1059_v15  ;;  %v1857_v53 = vsel %vm904_vm4, %v4424_v52, 0.0  ;;  %3248 = vmatprep.mubr.msk.bf16.mxu0 %vm3881_vm0, %v3880_v14 }
 0x4de   : > { %v4433_v17 = vpop.eup %3608  ;;  %1858 = vadd.xlane.f32.xlu1 %v1857_v53  ;;  %3258 = vmatprep.subr.bf16.mxu0 %v3880_v14 }
 0x4df   : > { %v1860_v21 = vsel %vm904_vm4, %v4433_v17, 0.0  ;;  %v4441_v26 = vpop.eup %3610 }
 0x4e0   : > { %v1720_v27 = vsel %vm904_vm4, %v4441_v26, 0.0 }
 0x4e2   : > { %1861 = vadd.xlane.f32.xlu1 %v1860_v21 }
 0x4f3   : > { %1595 = vrot.lane.b32.xlu1 %v4215_v24, %s3882_s20 }
 0x4fb   : > { %1721 = vadd.xlane.f32.xlu0 %v1720_v27 }
 0x511   : > { %1732 = vrot.lane.b32.xlu0 %v4215_v24, %s3883_s3 }
 0x515   : > { %1869 = vrot.lane.b32.xlu0 %v4215_v24, %s3884_s18 }
 0x53b   : > { %v1048_v60 = vpop.xlane.xlu0 %1047 }
 0x53c   : > { %3612 = vrcp.f32 %v1048_v60 }
 0x53f   : > { %v1051_v11 = vpop.xlane.xlu1 %1050 }
 0x540   : > { %3614 = vrcp.f32 %v1051_v11 }
 0x543   : > { %v1186_v35 = vpop.xlane.xlu0 %1185 }
 0x544   : > { %3616 = vrcp.f32 %v1186_v35 }
 0x545   : > { %v1189_v62 = vpop.xlane.xlu1 %1188 }
 0x546   : > { %3618 = vrcp.f32 %v1189_v62  ;;  %v3613_v1 = vpop.eup %3612 }
 0x547   : > { %v1054_v3 = vmul.f32 %v3613_v1, %v4369_v51 }
 0x54a   : > { %v3615_v37 = vpop.eup %3614 }
 0x54b   : > { %v1055_v2 = vmul.f32 %v3615_v37, %v4374_v55  ;;  %v1324_v4 = vpop.xlane.xlu0 %1323 }
 0x54c   : > { %3620 = vrcp.f32 %v1324_v4 }
 0x54d   : > { %v1327_v7 = vpop.xlane.xlu1 %1326  ;;  %v1056_v8 = vpack.c.bf16 %v1055_v2, %v1054_v3 }
 0x54e   : > { %3622 = vrcp.f32 %v1327_v7  ;;  %v3617_v46 = vpop.eup %3616 }
 0x54f   : > { %3249 = vmatmul.mubr.msk.bf16.vlgmr.msra.gmra.mrb[16].mxu0 %vm904_vm4, %v1056_v8  ;;  %v1192_v51 = vmul.f32 %v3617_v46, %v4379_v58 }
 0x550   : > { %v3619_v10 = vpop.eup %3618  ;;  %3259 = vmatpush3.bf16.msra.mxu0 %v1197_v57  ;;  %3260 = vmatprep.mubr.msk.bf16.mxu0 %vm3881_vm0, %v3880_v14 }
 0x551   : > { %v1193_v13 = vmul.f32 %v3619_v10, %v4383_v61  ;;  %3270 = vmatprep.subr.bf16.mxu0 %v3880_v14 }
 0x553   : > { %v1456_v55 = vpop.xlane.xlu0 %1455  ;;  %v1194_v18 = vpack.c.bf16 %v1193_v13, %v1192_v51 }
 0x554   : > { %3624 = vrcp.f32 %v1456_v55 }
 0x555   : > { %v1459_v48 = vpop.xlane.xlu1 %1458 }
 0x556   : > { %3626 = vrcp.f32 %v1459_v48  ;;  %v3621_v19 = vpop.eup %3620  ;;  %v3480_v48 = vld [vmem:[#allocation9] sm:$0xff]  }
 0x557   : > { %3261 = vmatmul.mubr.msk.bf16.vlgmr.msra.gmra.mrb[20].mxu0 %vm904_vm4, %v1194_v18  ;;  %v1335_v22 = vpop.permute.xlu0 %1334  ;;  %v1330_v58 = vmul.f32 %v3621_v19, %v4389_v6  ;;  %v3481_v18 = vld [vmem:[#allocation9 + $0x8] sm:$0xff]   ;;  %3324 = vmatprep.subr.bf16.mxu1 %v3480_v48  ;;  %v3482_v19 = vld [vmem:[#allocation9 + $0x10] sm:$0xff]  }
 0x558   : > { %v3623_v25 = vpop.eup %3622  ;;  %3271 = vmatpush3.bf16.msra.mxu0 %v1335_v22  ;;  %3272 = vmatprep.mubr.msk.bf16.mxu0 %vm3881_vm0, %v3880_v14 }
 0x559   : > { %v1331_v61 = vmul.f32 %v3623_v25, %v4393_v9  ;;  %3282 = vmatprep.subr.bf16.mxu0 %v3880_v14  ;;  %3325 = vmatpush3.bf16.msra.mxu1 %v3480_v48  ;;  %v3483_v25 = vld [vmem:[#allocation9 + $0x18] sm:$0xff]  }
 0x55a   : > { %3326 = vmatprep.subr.bf16.mxu1 %v3481_v18 }
 0x55b   : > { %v1585_v0 = vpop.xlane.xlu1 %1584  ;;  %v1332_v29 = vpack.c.bf16 %v1331_v61, %v1330_v58 }
 0x55d   : > { %3327 = vmatpush3.bf16.msra.mxu1 %v3481_v18 }
 0x55e   : > { %v3625_v30 = vpop.eup %3624  ;;  %3328 = vmatprep.subr.bf16.mxu1 %v3482_v19 }
 0x55f   : > { %3273 = vmatmul.mubr.msk.bf16.vlgmr.msra.gmra.mrb[24].mxu0 %vm904_vm4, %v1332_v29  ;;  %v1588_v33 = vpop.xlane.xlu1 %1587  ;;  %v1462_v9 = vmul.f32 %v3625_v30, %v4399_v20  ;;  %v3484_v30 = vld [vmem:[#allocation9 + $0x20] sm:$0xff]  }
 0x560   : > { %v3627_v5 = vpop.eup %3626  ;;  %3283 = vmatpush3.bf16.msra.mxu0 %v4215_v24  ;;  %3284 = vmatprep.mubr.msk.bf16.mxu0 %vm3881_vm0, %v3880_v14  ;;  %3628 = vrcp.f32 %v1588_v33  ;;  %v3486_v33 = vld [vmem:[#allocation9 + $0x30] sm:$0xff]  }
 0x561   : > { %v1463_v31 = vmul.f32 %v3627_v5, %v4403_v28  ;;  %3294 = vmatprep.subr.bf16.mxu0 %v3880_v14  ;;  %3630 = vrcp.f32 %v1585_v0  ;;  %3329 = vmatpush3.bf16.msra.mxu1 %v3482_v19  ;;  %v3485_v5 = vld [vmem:[#allocation9 + $0x28] sm:$0xff]  }
 0x562   : > { %3330 = vmatprep.subr.bf16.mxu1 %v3483_v25 }
 0x563   : > { %v1464_v6 = vpack.c.bf16 %v1463_v31, %v1462_v9  ;;  %v3487_v9 = vld [vmem:[#allocation9 + $0x38] sm:$0xff]  }
 0x565   : > { %v1725_v59 = vpop.xlane.xlu1 %1724  ;;  %3331 = vmatpush3.bf16.msra.mxu1 %v3483_v25 }
 0x566   : > { %3632 = vrcp.f32 %v1725_v59  ;;  %3332 = vmatprep.subr.bf16.mxu1 %v3484_v30 }
 0x567   : > { %3285 = vmatmul.mubr.msk.bf16.vlgmr.msra.gmra.mrb[28].mxu0 %vm904_vm4, %v1464_v6 }
 0x568   : > { %3296 = vmatprep.mubr.msk.bf16.mxu0 %vm3881_vm0, %v3880_v14 }
 0x569   : > { %3333 = vmatpush3.bf16.msra.mxu1 %v3484_v30 }
 0x56a   : > { %v3629_v38 = vpop.eup %3628  ;;  %3334 = vmatprep.subr.bf16.mxu1 %v3485_v5 }
 0x56b   : > { %v1859_v24 = vpop.xlane.xlu1 %1858  ;;  %v3631_v63 = vpop.eup %3630  ;;  %v1592_v28 = vmul.f32 %v3629_v38, %v4412_v40 }
 0x56c   : > { %v1591_v16 = vmul.f32 %v3631_v63, %v4408_v36 }
 0x56d   : > { %3335 = vmatpush3.bf16.msra.mxu1 %v3485_v5  ;;  %v3502_v5 = vld [vmem:[#allocation10 + $0x44] ss:$16 sps:$4 sm:$0xff]  }
 0x56e   : > { %v1593_v20 = vpack.c.bf16 %v1592_v28, %v1591_v16  ;;  %3336 = vmatprep.subr.bf16.mxu1 %v3486_v33 }
 0x56f   : > { %v1862_v41 = vpop.xlane.xlu1 %1861 }
 0x570   : > { %v3633_v36 = vpop.eup %3632 }
 0x571   : > { %v1729_v45 = vmul.f32 %v3633_v36, %v4418_v47  ;;  %3337 = vmatpush3.bf16.msra.mxu1 %v3486_v33  ;;  %v3500_v33 = vld [vmem:[#allocation10 + $0x40] ss:$16 sps:$4 sm:$0xff]  }
 0x572   : > { %3338 = vmatprep.subr.bf16.mxu1 %v3487_v9 }
 0x573   : > { %v1596_v42 = vpop.permute.xlu1 %1595 }
 0x574   : > { %3295 = vmatpush3.bf16.msra.mxu0 %v1596_v42 }
 0x575   : > { %3306 = vmatprep.subr.bf16.mxu0 %v3880_v14  ;;  %3339 = vmatpush3.bf16.msra.mxu1 %v3487_v9  ;;  %v3503_v9 = vld [vmem:[#allocation10 + $0x48] ss:$16 sps:$4 sm:$0xff]  }
 0x577   : > { %3297 = vmatmul.mubr.msk.bf16.vlgmr.msra.gmra.mrb[32].mxu0 %vm904_vm4, %v1593_v20 }
 0x578   : > { %3308 = vmatprep.mubr.msk.bf16.mxu0 %vm3881_vm0, %v3880_v14 }
 0x588   : > { %v1722_v43 = vpop.xlane.xlu0 %1721 }
 0x589   : > { %3634 = vrcp.f32 %v1722_v43 }
 0x58a   : > { %3636 = vrcp.f32 %v1862_v41 }
 0x58b   : > { %3638 = vrcp.f32 %v1859_v24 }
 0x58c   : > { %v1733_v44 = vpop.permute.xlu0 %1732 }
 0x58d   : > { %3307 = vmatpush3.bf16.msra.mxu0 %v1733_v44 }
 0x58e   : > { %3318 = vmatprep.subr.bf16.mxu0 %v3880_v14 }
 0x590   : > { %v1870_v12 = vpop.permute.xlu0 %1869 }
 0x593   : > { %v3635_v40 = vpop.eup %3634 }
 0x594   : > { %v1728_v49 = vmul.f32 %v3635_v40, %v4441_v26  ;;  %v3637_v32 = vpop.eup %3636 }
 0x595   : > { %v3639_v34 = vpop.eup %3638  ;;  %v1866_v15 = vmul.f32 %v3637_v32, %v4433_v17  ;;  %v3017_v32 = vld [vmem:[%s4619_s5] ss:$0 sm:$0xff] }
 0x596   : > { %v1730_v50 = vpack.c.bf16 %v1729_v45, %v1728_v49  ;;  %v1865_v53 = vmul.f32 %v3639_v34, %v4424_v52 }
 0x598   : > { %3309 = vmatmul.mubr.msk.bf16.vlgmr.msra.gmra.mrb[36].mxu0 %vm904_vm4, %v1730_v50  ;;  %v1867_v21 = vpack.c.bf16 %v1866_v15, %v1865_v53  ;;  %v2044_v15 = vld [vmem:[%s4160_s26] sm:$0xff] }
 0x599   : > { %3319 = vmatpush3.bf16.msra.mxu0 %v1870_v12  ;;  %3320 = vmatprep.mubr.msk.bf16.mxu0 %vm3881_vm0, %v3880_v14 }
 0x5a0   : > { %3321 = vmatmul.mubr.msk.bf16.vlgmr.msra.gmra.mrb[40].mxu0 %vm904_vm4, %v1867_v21 }
 0x5a1   : > { %2366 = vmatprep.mubr.bf16.mxu0 %v3879_v39 }
 0x5af   : > { %v965_v47 = vpop.f32.mrb[12].mxu0 }
 0x5b0   : > { %v3238_v23 = vpop.f32.mrb[13].mxu0 }
 0x5b1   : > { %v968_v56 = vpop.f32.mrb[14].mxu0  ;;  %v2045_v23 = vld [vmem:[%s4160_s26 + $0x8] sm:$0xff] }
 0x5b2   : > { %v972_v26 = vpack.c.bf16 %v968_v56, %v965_v47  ;;  %v3239_v27 = vpop.f32.mrb[15].mxu0 }
 0x5b4   : > { %973 = vst.msk [vmem:[#allocation3] sm:$0xff] %vm852_vm1, %v972_v26 }
 0x622   : > { %v1098_v57 = vpop.f32.mrb[16].mxu0 }
 0x623   : > { %v3250_v60 = vpop.f32.mrb[17].mxu0 }
 0x624   : > { %v1101_v11 = vpop.f32.mrb[18].mxu0 }
 0x625   : > { %v1105_v14 = vpack.c.bf16 %v1101_v11, %v1098_v57  ;;  %v3251_v35 = vpop.f32.mrb[19].mxu0  ;;  %v2046_v57 = vld [vmem:[%s4160_s26 + $0x10] sm:$0xff] }
 0x626   : > { %v2047_v35 = vld [vmem:[%s4160_s26 + $0x18] sm:$0xff]  ;;  %s2834_s26 = scalar_lea.sflag [#allocation6], %s4154_s15 }
 0x627   : > { %1107 = vrot.lane.b32.xlu0 %v1105_v14, %s3884_s18 }
 0x62a   : > { %v1236_v52 = vpop.f32.mrb[20].mxu0 }
 0x62b   : > { %v3262_v17 = vpop.f32.mrb[21].mxu0 }
 0x62c   : > { %v1239_v62 = vpop.f32.mrb[22].mxu0  ;;  %v3488_v17 = vld [vmem:[#allocation10] ss:$16 sps:$4 sm:$0xff]  }
 0x62d   : > { %v1243_v1 = vpack.c.bf16 %v1239_v62, %v1236_v52  ;;  %v3263_v37 = vpop.f32.mrb[23].mxu0  ;;  %v3490_v62 = vld [vmem:[#allocation10 + $0x4] ss:$16 sps:$4 sm:$0xff]  }
 0x62e   : > { %v3493_v37 = vld [vmem:[#allocation10 + $0xc] ss:$16 sps:$4 sm:$0xff]   ;;  %2334 = vmatprep.subr.bf16.mxu0 %v3490_v62 }
 0x62f   : > { %1245 = vrot.lane.b32.xlu1 %v1243_v1, %s3883_s3  ;;  %v3491_v1 = vld [vmem:[#allocation10 + $0x8] ss:$16 sps:$4 sm:$0xff]   ;;  %2387 = vmatprep.subr.bf16.mxu1 %v3493_v37 }
 0x630   : > { %2335 = vmatpush1.bf16.msra.mxu0 %v3488_v17 }
 0x632   : > { %v1374_v3 = vpop.f32.mrb[24].mxu0 }
 0x633   : > { %v3274_v2 = vpop.f32.mrb[25].mxu0 }
 0x634   : > { %v1377_v4 = vpop.f32.mrb[26].mxu0  ;;  %v3499_v2 = vld [vmem:[#allocation10 + $0x2c] ss:$16 sps:$4 sm:$0xff]  }
 0x635   : > { %v1381_v7 = vpack.c.bf16 %v1377_v4, %v1374_v3  ;;  %v3275_v8 = vpop.f32.mrb[27].mxu0  ;;  %v3496_v3 = vld [vmem:[#allocation10 + $0x24] ss:$16 sps:$4 sm:$0xff]   ;;  %v3494_v4 = vld [vmem:[#allocation10 + $0x20] ss:$16 sps:$4 sm:$0xff]  }
 0x636   : > { %2336 = vmatprep.subr.bf16.mxu0 %v3496_v3 }
 0x637   : > { %1383 = vrot.lane.b32.xlu1 %v1381_v7, %s3882_s20  ;;  %v3497_v7 = vld [vmem:[#allocation10 + $0x28] ss:$16 sps:$4 sm:$0xff]   ;;  %2337 = vmatpush1.bf16.msra.mxu0 %v3494_v4 }
 0x638   : > { %2338 = vmatprep.subr.bf16.mxu0 %v3502_v5  ;;  %v3540_v5 = vld [vmem:[#allocation12 + $0x48] sm:$0xff]  }
 0x63a   : > { %v1502_v46 = vpop.f32.mrb[28].mxu0 }
 0x63b   : > { %v3286_v10 = vpop.f32.mrb[29].mxu0  ;;  %2339 = vmatpush1.bf16.msra.mxu0 %v3500_v33 }
 0x63c   : > { %v1505_v13 = vpop.f32.mrb[30].mxu0 }
 0x63d   : > { %v1509_v51 = vpack.c.bf16 %v1505_v13, %v1502_v46  ;;  %v3287_v55 = vpop.f32.mrb[31].mxu0 }
 0x63f   : > { %1510 = vst.msk [vmem:[#allocation3 + $0x8] sm:$0xff] %vm852_vm1, %v1509_v51 }
 0x64a   : > { %v1635_v22 = vpop.f32.mrb[32].mxu0 }
 0x64b   : > { %v3298_v61 = vpop.f32.mrb[33].mxu0 }
 0x64c   : > { %v1638_v58 = vpop.f32.mrb[34].mxu0 }
 0x64d   : > { %v1642_v0 = vpack.c.bf16 %v1638_v58, %v1635_v22  ;;  %v3299_v29 = vpop.f32.mrb[35].mxu0 }
 0x64f   : > { %1644 = vrot.lane.b32.xlu0 %v1642_v0, %s3884_s18  ;;  %s489_s18 = scalar_lea.vmem [#allocation13], %s2969_s11  ;;  %s3099_s11 = sshll.u32 %s3975_s25, 9 }
 0x650   : > { %s2847_s13 = sshll.u32 %s489_s18, 4  ;;  %s4570_s9 = scalar_lea.hbm %s4656_s14, %s3099_s11  ;;  %s4564_s13 = int_to_ptr.vmem [resolvable:$true] %s2847_s13 }
 0x651   : > { %s3790_s27 = scalar_lea.vmem %s4564_s13, 512  ;;  %s3886_s25 = smov [#allocation13]  }
 0x652   : > { %p3791_p6 = scmp.ne.s32.totalorder %s4564_s13, %s3790_s27  ;;  %s3794_s29 = sshll.u32 %s3886_s25, 4  ;;  %s3795_s29 = int_to_ptr.vmem [resolvable:$false] %s3794_s29 }
 0x653   : > { %p3797_p3 = scmp.lt.s32.totalorder %s4564_s13, %s3795_s29 }
 0x654   : > { %p3792_p8 = pnand %p3791_p6, %p4102_p4 }
 0x656   : > { %p3793_p13 = pneg %p3792_p8 }
 0x66b   : > { %v1772_v31 = vpop.f32.mrb[36].mxu0 }
 0x66c   : > { %v3310_v6 = vpop.f32.mrb[37].mxu0 }
 0x66d   : > { %v1775_v59 = vpop.f32.mrb[38].mxu0  ;;  %v3508_v6 = vld [vmem:[#allocation10 + $0x64] ss:$16 sps:$4 sm:$0xff]  }
 0x66e   : > { %v1779_v24 = vpack.c.bf16 %v1775_v59, %v1772_v31  ;;  %v3311_v38 = vpop.f32.mrb[39].mxu0  ;;  %v3505_v31 = vld [vmem:[#allocation10 + $0x4c] ss:$16 sps:$4 sm:$0xff]   ;;  %2340 = vmatprep.subr.bf16.mxu0 %v3508_v6 }
 0x66f   : > { %v3511_v59 = vld [vmem:[#allocation10 + $0x6c] ss:$16 sps:$4 sm:$0xff]   ;;  %v3509_v38 = vld [vmem:[#allocation10 + $0x68] ss:$16 sps:$4 sm:$0xff]  }
 0x670   : > { %1781 = vrot.lane.b32.xlu0 %v1779_v24, %s3883_s3  ;;  %v3506_v24 = vld [vmem:[#allocation10 + $0x60] ss:$16 sps:$4 sm:$0xff]   ;;  %v3543_v6 = vld [vmem:[#allocation12 + $0x88] sm:$0xff]   ;;  %s4655_s3 = sld [smem:[#allocation22_spill]] }
 0x671   : > { %2341 = vmatpush1.bf16.msra.mxu0 %v3506_v24 }
 0x673   : > { %v1909_v41 = vpop.f32.mrb[40].mxu0 }
 0x674   : > { %v3322_v63 = vpop.f32.mrb[41].mxu0 }
 0x675   : > { %v1912_v28 = vpop.f32.mrb[42].mxu0  ;;  %v3517_v63 = vld [vmem:[#allocation10 + $0x8c] ss:$16 sps:$4 sm:$0xff]  }
 0x676   : > { %v1916_v16 = vpack.c.bf16 %v1912_v28, %v1909_v41  ;;  %v3323_v42 = vpop.f32.mrb[43].mxu0  ;;  %v3514_v41 = vld [vmem:[#allocation10 + $0x84] ss:$16 sps:$4 sm:$0xff]   ;;  %v3512_v28 = vld [vmem:[#allocation10 + $0x80] ss:$16 sps:$4 sm:$0xff]  }
 0x677   : > { %2342 = vmatprep.subr.bf16.mxu0 %v3514_v41  ;;  %v3520_v42 = vld [vmem:[#allocation10 + $0xa4] ss:$16 sps:$4 sm:$0xff]  }
 0x678   : > { %1918 = vrot.lane.b32.xlu1 %v1916_v16, %s3882_s20  ;;  %v3515_v16 = vld [vmem:[#allocation10 + $0x88] ss:$16 sps:$4 sm:$0xff]   ;;  %2343 = vmatpush1.bf16.msra.mxu0 %v3512_v28  ;;  %v3546_v41 = vld [vmem:[#allocation12 + $0x10] sm:$0xff]  }
 0x679   : > { %2344 = vmatprep.subr.bf16.mxu0 %v3520_v42  ;;  %v3548_v28 = vld [vmem:[#allocation12 + $0x58] sm:$0xff]  }
 0x67a   : > { %v3551_v42 = vld [vmem:[#allocation12 + $0x98] sm:$0xff]  }
 0x699   : > { %v1108_v20 = vpop.permute.xlu0 %1107 }
 0x69a   : > { %1111 = vst.msk [vmem:[#allocation3] sm:$0xff] %vm1110_vm5, %v1108_v20  ;;  %v3523_v20 = vld [vmem:[#allocation10 + $0xac] ss:$16 sps:$4 sm:$0xff]  }
 0x6a1   : > { %v1246_v43 = vpop.permute.xlu1 %1245 }
 0x6a2   : > { %1249 = vst.msk [vmem:[#allocation3] sm:$0xff] %vm1248_vm6, %v1246_v43  ;;  %v3518_v43 = vld [vmem:[#allocation10 + $0xa0] ss:$16 sps:$4 sm:$0xff]  }
 0x6a3   : > { %2345 = vmatpush1.bf16.msra.mxu0 %v3518_v43  ;;  %v3553_v43 = vld [vmem:[#allocation12 + $0xe0] sm:$0xff]  }
 0x6a9   : > { %v1384_v44 = vpop.permute.xlu1 %1383 }
 0x6aa   : > { %1387 = vst.msk [vmem:[#allocation3] sm:$0xff] %vm1386_vm7, %v1384_v44  ;;  %v3521_v44 = vld [vmem:[#allocation10 + $0xa8] ss:$16 sps:$4 sm:$0xff]  }
 0x6b1   : > { %v1922_v36 = vld [vmem:[#allocation3] sm:$0xff] }
 0x6b2   : > { %3340 = vmatprep.mubr.bf16.mxu1 %v1922_v36  ;;  %v3524_v36 = vld [vmem:[#allocation10 + $0xc0] ss:$16 sps:$4 sm:$0xff]  }
 0x6c1   : > { %v1645_v40 = vpop.permute.xlu0 %1644 }
 0x6c2   : > { %1647 = vst.msk [vmem:[#allocation3 + $0x8] sm:$0xff] %vm1110_vm5, %v1645_v40  ;;  %v3526_v40 = vld [vmem:[#allocation10 + $0xc4] ss:$16 sps:$4 sm:$0xff]  }
 0x6c3   : > { %2346 = vmatprep.subr.bf16.mxu0 %v3526_v40  ;;  %v3556_v40 = vld [vmem:[#allocation12 + $0x68] sm:$0xff]  }
 0x6c4   : > { %2347 = vmatpush1.bf16.msra.mxu0 %v3524_v36  ;;  %v3555_v36 = vld [vmem:[#allocation12 + $0xa0] sm:$0xff]  }
 0x6e2   : > { %v1782_v45 = vpop.permute.xlu0 %1781 }
 0x6e3   : > { %1784 = vst.msk [vmem:[#allocation3 + $0x8] sm:$0xff] %vm1248_vm6, %v1782_v45  ;;  %v3527_v45 = vld [vmem:[#allocation10 + $0xc8] ss:$16 sps:$4 sm:$0xff]  }
 0x6ea   : > { %v1919_v49 = vpop.permute.xlu1 %1918 }
 0x6eb   : > { %1921 = vst.msk [vmem:[#allocation3 + $0x8] sm:$0xff] %vm1386_vm7, %v1919_v49  ;;  %v3529_v49 = vld [vmem:[#allocation10 + $0xcc] ss:$16 sps:$4 sm:$0xff]  }
 0x6f2   : > { %v1923_v50 = vld [vmem:[#allocation3 + $0x8] sm:$0xff] }
 0x6f3   : > { %3341 = vmatmul.mubr.bf16.vlgmr.msra.gmra.mrb[32].mxu1 %v1923_v50  ;;  %v3532_v50 = vld [vmem:[#allocation10 + $0xe4] ss:$16 sps:$4 sm:$0xff]  }
 0x6f4   : > { %2419 = vmatprep.mubr.bf16.mxu1 %v3879_v39  ;;  %2388 = vmatpush1.bf16.msra.mxu1 %v3491_v1 }
 0x6f5   : > { %2389 = vmatprep.subr.bf16.mxu1 %v3499_v2  ;;  %2348 = vmatprep.subr.bf16.mxu0 %v3532_v50  ;;  %v3026_v2 = vld [vmem:[%s4620_s6] ss:$0 sm:$0xff]  ;;  %v3559_v50 = vld [vmem:[#allocation12 + $0xa8] sm:$0xff]  }
 0x6f8   : > { %2390 = vmatpush1.bf16.msra.mxu1 %v3497_v7 }
 0x6f9   : > { %2391 = vmatprep.subr.bf16.mxu1 %v3505_v31  ;;  %v3541_v31 = vld [vmem:[#allocation12 + $0xc8] sm:$0xff]  }
 0x6fc   : > { %2392 = vmatpush1.bf16.msra.mxu1 %v3503_v9 }
 0x6fd   : > { %2393 = vmatprep.subr.bf16.mxu1 %v3511_v59  ;;  %v3545_v59 = vld [vmem:[#allocation12 + $0xd0] sm:$0xff]  }
 0x700   : > { %2394 = vmatpush1.bf16.msra.mxu1 %v3509_v38 }
 0x701   : > { %2395 = vmatprep.subr.bf16.mxu1 %v3517_v63  ;;  %v3547_v63 = vld [vmem:[#allocation12 + $0x90] sm:$0xff]  }
 0x704   : > { %2396 = vmatpush1.bf16.msra.mxu1 %v3515_v16  ;;  %v3549_v16 = vld [vmem:[#allocation12 + $0xd8] sm:$0xff]  }
 0x705   : > { %2397 = vmatprep.subr.bf16.mxu1 %v3523_v20  ;;  %v3552_v20 = vld [vmem:[#allocation12 + $0x60] sm:$0xff]  }
 0x708   : > { %2398 = vmatpush1.bf16.msra.mxu1 %v3521_v44  ;;  %v3554_v44 = vld [vmem:[#allocation12 + $0x20] sm:$0xff]  }
 0x709   : > { %2399 = vmatprep.subr.bf16.mxu1 %v3529_v49  ;;  %v3558_v49 = vld [vmem:[#allocation12 + $0x28] sm:$0xff]  }
 0x70c   : > { %2400 = vmatpush1.bf16.msra.mxu1 %v3527_v45  ;;  %v3557_v45 = vld [vmem:[#allocation12 + $0xe8] sm:$0xff]  }
 0x7c6   : > { %v3342_v12 = vpop.f32.mrb[32].mxu1 }
 0x7c7   : > { %v2029_v34 = vpop.f32.mrb[33].mxu1  ;;  %v2038_v56 = vadd.f32 %v3342_v12, %v3017_v32  ;;  %v3530_v12 = vld [vmem:[#allocation10 + $0xe0] ss:$16 sps:$4 sm:$0xff]  }
 0x7c8   : > { %v2030_v53 = vadd.f32 %v3017_v32, %v2029_v34  ;;  %v3343_v21 = vpop.f32.mrb[34].mxu1  ;;  %v3533_v34 = vld [vmem:[#allocation10 + $0xe8] ss:$16 sps:$4 sm:$0xff]   ;;  %2349 = vmatpush1.bf16.msra.mxu0 %v3530_v12  ;;  %v3561_v12 = vld [vmem:[#allocation12 + $0xf0] sm:$0xff]  }
 0x7c9   : > { %v2032_v47 = vpop.f32.mrb[35].mxu1  ;;  %v4509_v11 = vadd.f32 %v2046_v57, %v2038_v56  ;;  %v2041_v14 = vadd.f32 %v3343_v21, %v3017_v32 }
 0x7ca   : > { %v4503_v26 = vadd.f32 %v2044_v15, %v2030_v53  ;;  %v2033_v27 = vadd.f32 %v3017_v32, %v2032_v47  ;;  %v3535_v32 = vld [vmem:[#allocation10 + $0xec] ss:$16 sps:$4 sm:$0xff]   ;;  %v3536_v15 = vld [vmem:[#allocation12 + $0x40] sm:$0xff]  }
 0x7cb   : > { %v4514_v52 = vadd.f32 %v2047_v35, %v2041_v14  ;;  %2401 = vmatprep.subr.bf16.mxu1 %v3535_v32  ;;  %v3537_v53 = vld [vmem:[#allocation12 + $0xc0] sm:$0xff]   ;;  %3152 = vmatprep.subr.bf16.mxu0 %v3536_v15  ;;  %v3560_v32 = vld [vmem:[#allocation12 + $0x70] sm:$0xff]  }
 0x7cc   : > { %v4506_v60 = vadd.f32 %v2045_v23, %v2033_v27  ;;  %2054 = vadd.xlane.f32.xlu0 %v4503_v26  ;;  %2402 = vmatpush1.bf16.msra.mxu1 %v3533_v34  ;;  %v3562_v34 = vld [vmem:[#allocation12 + $0x30] sm:$0xff]  }
 0x7cd   : > { %3180 = vmatprep.subr.bf16.mxu1 %v3537_v53  ;;  %v3563_v15 = vld [vmem:[#allocation12 + $0xb0] sm:$0xff]   ;;  %v3564_v53 = vld [vmem:[#allocation12 + $0x78] sm:$0xff]  }
 0x7ce   : > { %2056 = vadd.xlane.f32.xlu1 %v4506_v60 }
 0x7d0   : > { %2058 = vadd.xlane.f32.xlu0 %v4509_v11 }
 0x7d4   : > { %2060 = vadd.xlane.f32.xlu0 %v4514_v52 }
 0x859   : > { %v2055_v8 = vpop.xlane.xlu0 %2054 }
 0x85a   : > { %v2062_v46 = vmul.f32 0.0078125, %v2055_v8 }
 0x85b   : > { %v2057_v10 = vpop.xlane.xlu1 %2056 }
 0x85c   : > { %v4518_v13 = vsub.f32 %v4503_v26, %v2062_v46  ;;  %v2063_v51 = vmul.f32 0.0078125, %v2057_v10 }
 0x85d   : > { %v2059_v55 = vpop.xlane.xlu0 %2058 }
 0x85e   : > { %v4521_v48 = vsub.f32 %v4506_v60, %v2063_v51  ;;  %v2064_v18 = vmul.f32 0.0078125, %v2059_v55  ;;  %v2070_v19 = vmul.f32 %v4518_v13, %v4518_v13  ;;  %v3027_v51 = vld [vmem:[%s4621_s7] ss:$0 sm:$0xff] }
 0x860   : > { %v4526_v22 = vsub.f32 %v4509_v11, %v2064_v18  ;;  %2074 = vadd.xlane.f32.xlu0 %v2070_v19  ;;  %v2071_v25 = vmul.f32 %v4521_v48, %v4521_v48 }
 0x861   : > { %v2061_v61 = vpop.xlane.xlu0 %2060 }
 0x862   : > { %v2065_v58 = vmul.f32 0.0078125, %v2061_v61  ;;  %2076 = vadd.xlane.f32.xlu1 %v2071_v25  ;;  %v2072_v0 = vmul.f32 %v4526_v22, %v4526_v22 }
 0x864   : > { %v4533_v29 = vsub.f32 %v4514_v52, %v2065_v58  ;;  %2078 = vadd.xlane.f32.xlu0 %v2072_v0 }
 0x866   : > { %v2073_v30 = vmul.f32 %v4533_v29, %v4533_v29 }
 0x868   : > { %2080 = vadd.xlane.f32.xlu1 %v2073_v30  ;;  %v3538_v30 = vld [vmem:[#allocation12] sm:$0xff]  }
 0x8ed   : > { %v2075_v21 = vpop.xlane.xlu0 %2074 }
 0x8ee   : > { %v2082_v47 = vmul.f32 0.0078125, %v2075_v21  ;;  %v3565_v21 = vld [vmem:[#allocation12 + $0xf8] sm:$0xff]  }
 0x8ef   : > { %v2077_v23 = vpop.xlane.xlu1 %2076 }
 0x8f0   : > { %v2086_v56 = vadd.f32 1e-05, %v2082_v47  ;;  %v2083_v27 = vmul.f32 0.0078125, %v2077_v23  ;;  %v3566_v47 = vld [vmem:[#allocation12 + $0x38] sm:$0xff]  }
 0x8f1   : > { %v2079_v57 = vpop.xlane.xlu0 %2078  ;;  %v3567_v23 = vld [vmem:[#allocation12 + $0xb8] sm:$0xff]  }
 0x8f2   : > { %3640 = vrsqrt.f32 %v2086_v56  ;;  %v2087_v14 = vadd.f32 1e-05, %v2083_v27  ;;  %v2084_v35 = vmul.f32 0.0078125, %v2079_v57  ;;  %v2156_v56 = vsub.s32 0, %v4267_v54  ;;  %v2152_v57 = vld [vmem:[%s4654_s17] sm:$0xf] }
 0x8f3   : > { %v2164_v27 = vsub.s32 2, %v4267_v54  ;;  %s3796_s17 = scalar_lea.vmem %s3795_s29, 1024 }
 0x8f4   : > { %3642 = vrsqrt.f32 %v2087_v14  ;;  %v2088_v17 = vadd.f32 1e-05, %v2084_v35  ;;  %v2160_v14 = vsub.s32 1, %v4267_v54  ;;  %v2168_v35 = vsub.s32 3, %v4267_v54  ;;  %p3798_p7 = scmp.lt.s32.totalorder %s3796_s17, %s3790_s27 }
 0x8f5   : > { %v2081_v62 = vpop.xlane.xlu1 %2080 }
 0x8f6   : > { %3644 = vrsqrt.f32 %v2088_v17  ;;  %v2085_v1 = vmul.f32 0.0078125, %v2081_v62  ;;  %v2157_v17 = vrot.slane %v2152_v57, %v2156_v56  ;;  %v2165_v62 = vrot.slane %v2152_v57, %v2164_v27  ;;  %p3799_p9 = por %p3798_p7, %p3797_p3 }
 0x8f8   : > { %v2089_v37 = vadd.f32 1e-05, %v2085_v1  ;;  %v2161_v1 = vrot.slane %v2152_v57, %v2160_v14  ;;  %p3800_p12 = pnand %p3799_p9, %p3793_p13 }
 0x8fa   : > { %3646 = vrsqrt.f32 %v2089_v37  ;;  %v2169_v37 = vrot.slane %v2152_v57, %v2168_v35 }
 0x8fc   : > { %v3641_v3 = vpop.eup %3640 }
 0x8fd   : > { %v2094_v4 = vmul.f32 %v3641_v3, %v4518_v13  ;;  %v3539_v13 = vld [vmem:[#allocation12 + $0x80] sm:$0xff]  }
 0x8fe   : > { %v3643_v7 = vpop.eup %3642 }
 0x8ff   : > { %v2095_v8 = vmul.f32 %v3643_v7, %v4521_v48  ;;  %v2104_v46 = vmul.f32 %v3026_v2, %v2094_v4 }
 0x900   : > { %v3645_v10 = vpop.eup %3644 }
 0x901   : > { %v2105_v55 = vmul.f32 %v3026_v2, %v2095_v8  ;;  %v2114_v18 = vadd.f32 %v3027_v51, %v2104_v46  ;;  %v2096_v25 = vmul.f32 %v3645_v10, %v4526_v22  ;;  %v3542_v22 = vld [vmem:[#allocation12 + $0x8] sm:$0xff]  }
 0x903   : > { %v2115_v19 = vadd.f32 %v3027_v51, %v2105_v55  ;;  %v2106_v48 = vmul.f32 %v3026_v2, %v2096_v25 }
 0x904   : > { %v3647_v61 = vpop.eup %3646 }
 0x905   : > { %v2118_v58 = vpack.c.bf16 %v2115_v19, %v2114_v18  ;;  %v2097_v0 = vmul.f32 %v3647_v61, %v4533_v29  ;;  %v3544_v29 = vld [vmem:[#allocation12 + $0x50] sm:$0xff]   ;;  %v2116_v24 = vadd.f32 %v3027_v51, %v2106_v48 }
 0x907   : > { %2367 = vmatmul.mubr.bf16.vlgmr.msra.gmra.mrb[44].mxu0 %v2118_v58  ;;  %2420 = vmatmul.mubr.bf16.vlgmr.msra.gmra.mrb[36].mxu1 %v2118_v58  ;;  %v2107_v33 = vmul.f32 %v3026_v2, %v2097_v0 }
 0x908   : > { %2376 = vmatprep.mubr.bf16.mxu0 %v3879_v39  ;;  %2429 = vmatprep.mubr.bf16.mxu1 %v3879_v39  ;;  %v3550_v39 = vld [vmem:[#allocation12 + $0x18] sm:$0xff]  }
 0x909   : > { %v2117_v9 = vadd.f32 %v3027_v51, %v2107_v33  ;;  %3153 = vmatpush3.bf16.msra.mxu0 %v3538_v30  ;;  %3181 = vmatpush3.bf16.msra.mxu1 %v3539_v13 }
 0x90a   : > { %3154 = vmatprep.subr.bf16.mxu0 %v3540_v5  ;;  %3182 = vmatprep.subr.bf16.mxu1 %v3541_v31 }
 0x90b   : > { %v2119_v38 = vpack.c.bf16 %v2117_v9, %v2116_v24 }
 0x90d   : > { %3155 = vmatpush3.bf16.msra.mxu0 %v3542_v22  ;;  %3183 = vmatpush3.bf16.msra.mxu1 %v3543_v6 }
 0x90e   : > { %3156 = vmatprep.subr.bf16.mxu0 %v3544_v29  ;;  %3184 = vmatprep.subr.bf16.mxu1 %v3545_v59 }
 0x90f   : > { %2377 = vmatmul.mubr.bf16.gmra.mrb[48].mxu0 %v2119_v38  ;;  %2430 = vmatmul.mubr.bf16.gmra.mrb[40].mxu1 %v2119_v38 }
 0x911   : > { %3157 = vmatpush3.bf16.msra.mxu0 %v3546_v41  ;;  %3185 = vmatpush3.bf16.msra.mxu1 %v3547_v63 }
 0x912   : > { %3158 = vmatprep.subr.bf16.mxu0 %v3548_v28  ;;  %3186 = vmatprep.subr.bf16.mxu1 %v3549_v16 }
 0x915   : > { %3159 = vmatpush3.bf16.msra.mxu0 %v3550_v39  ;;  %3187 = vmatpush3.bf16.msra.mxu1 %v3551_v42 }
 0x916   : > { %3160 = vmatprep.subr.bf16.mxu0 %v3552_v20  ;;  %3188 = vmatprep.subr.bf16.mxu1 %v3553_v43 }
 0x919   : > { %3161 = vmatpush3.bf16.msra.mxu0 %v3554_v44  ;;  %3189 = vmatpush3.bf16.msra.mxu1 %v3555_v36 }
 0x91a   : > { %3162 = vmatprep.subr.bf16.mxu0 %v3556_v40  ;;  %3190 = vmatprep.subr.bf16.mxu1 %v3557_v45 }
 0x91d   : > { %3163 = vmatpush3.bf16.msra.mxu0 %v3558_v49  ;;  %3191 = vmatpush3.bf16.msra.mxu1 %v3559_v50 }
 0x91e   : > { %3164 = vmatprep.subr.bf16.mxu0 %v3560_v32  ;;  %3192 = vmatprep.subr.bf16.mxu1 %v3561_v12 }
 0x921   : > { %3165 = vmatpush3.bf16.msra.mxu0 %v3562_v34  ;;  %3193 = vmatpush3.bf16.msra.mxu1 %v3563_v15 }
 0x922   : > { %3166 = vmatprep.subr.bf16.mxu0 %v3564_v53  ;;  %3194 = vmatprep.subr.bf16.mxu1 %v3565_v21 }
 0x925   : > { %3167 = vmatpush3.bf16.msra.mxu0 %v3566_v47  ;;  %3195 = vmatpush3.bf16.msra.mxu1 %v3567_v23 }
 0x9da   : > { %v2368_v3 = vpop.f32.mrb[44].mxu0  ;;  %v2421_v2 = vpop.f32.mrb[36].mxu1 }
 0x9db   : > { %v2369_v4 = vadd.f32 %v2368_v3, %v2157_v17  ;;  %v2422_v7 = vadd.f32 %v2421_v2, %v2165_v62  ;;  %v2370_v8 = vpop.f32.mrb[45].mxu0  ;;  %v2423_v46 = vpop.f32.mrb[37].mxu1 }
 0x9dc   : > { %v2371_v10 = vadd.f32 %v2370_v8, %v2161_v1  ;;  %v2424_v51 = vadd.f32 %v2423_v46, %v2169_v37  ;;  %v2372_v55 = vpop.f32.mrb[46].mxu0  ;;  %v2425_v18 = vpop.f32.mrb[38].mxu1 }
 0x9dd   : > { %v2373_v19 = vadd.f32 %v2372_v55, %v2157_v17  ;;  %v2426_v25 = vadd.f32 %v2425_v18, %v2165_v62  ;;  %v2374_v61 = vpop.f32.mrb[47].mxu0  ;;  %v2427_v58 = vpop.f32.mrb[39].mxu1  ;;  %v2440_v30 = vmax.f32 %v2369_v4, 0.0  ;;  %v2442_v13 = vmax.f32 %v2422_v7, 0.0 }
 0x9de   : > { %v2375_v0 = vadd.f32 %v2374_v61, %v2161_v1  ;;  %v2428_v54 = vadd.f32 %v2427_v58, %v2169_v37  ;;  %v2441_v48 = vmax.f32 %v2371_v10, 0.0  ;;  %v2443_v33 = vmax.f32 %v2424_v51, 0.0 }
 0x9df   : > { %v2444_v5 = vmax.f32 %v2373_v19, 0.0  ;;  %v2446_v31 = vmax.f32 %v2426_v25, 0.0 }
 0x9e0   : > { %v2445_v9 = vmax.f32 %v2375_v0, 0.0  ;;  %v2447_v22 = vmax.f32 %v2428_v54, 0.0 }
 0x9e1   : > { %v2456_v6 = vpack.c.bf16 %v2444_v5, %v2440_v30  ;;  %v2458_v29 = vpack.c.bf16 %v2446_v31, %v2442_v13 }
 0x9e2   : > { %v2457_v59 = vpack.c.bf16 %v2445_v9, %v2441_v48  ;;  %v2459_v24 = vpack.c.bf16 %v2447_v22, %v2443_v33  ;;  %v2378_v38 = vpop.f32.mrb[48].mxu0  ;;  %v2431_v41 = vpop.f32.mrb[40].mxu1 }
 0x9e3   : > { %v2379_v63 = vadd.f32 %v2378_v38, %v2157_v17  ;;  %v2432_v28 = vadd.f32 %v2431_v41, %v2165_v62  ;;  %v2380_v16 = vpop.f32.mrb[49].mxu0  ;;  %v2433_v39 = vpop.f32.mrb[41].mxu1 }
 0x9e4   : > { %v2381_v42 = vadd.f32 %v2380_v16, %v2161_v1  ;;  %v2434_v20 = vadd.f32 %v2433_v39, %v2169_v37  ;;  %v2382_v43 = vpop.f32.mrb[50].mxu0  ;;  %v2435_v44 = vpop.f32.mrb[42].mxu1  ;;  %2759 = vmatprep.mubr.bf16.mxu0 %v2457_v59  ;;  %2808 = vmatprep.mubr.bf16.mxu1 %v2459_v24 }
 0x9e5   : > { %v2383_v36 = vadd.f32 %v2382_v43, %v2157_v17  ;;  %v2436_v40 = vadd.f32 %v2435_v44, %v2165_v62  ;;  %v2384_v45 = vpop.f32.mrb[51].mxu0  ;;  %v2437_v49 = vpop.f32.mrb[43].mxu1  ;;  %2760 = vmatmul.mubr.bf16.vlgmr.msra.gmra.mrb[52].mxu0 %v2456_v6  ;;  %2809 = vmatmul.mubr.bf16.vlgmr.msra.gmra.mrb[44].mxu1 %v2458_v29  ;;  %v2448_v12 = vmax.f32 %v2379_v63, 0.0  ;;  %v2450_v34 = vmax.f32 %v2432_v28, 0.0 }
 0x9e6   : > { %v2385_v50 = vadd.f32 %v2384_v45, %v2161_v1  ;;  %v2438_v32 = vadd.f32 %v2437_v49, %v2169_v37  ;;  %v2449_v21 = vmax.f32 %v2381_v42, 0.0  ;;  %v2451_v47 = vmax.f32 %v2434_v20, 0.0  ;;  %v3060_v1 = vld [vmem:[%s4655_s3] ss:$0 sm:$0xff] }
 0x9e7   : > { %v2452_v15 = vmax.f32 %v2383_v36, 0.0  ;;  %v2454_v53 = vmax.f32 %v2436_v40, 0.0 }
 0x9e8   : > { %v2453_v23 = vmax.f32 %v2385_v50, 0.0  ;;  %v2455_v56 = vmax.f32 %v2438_v32, 0.0 }
 0x9e9   : > { %v2460_v27 = vpack.c.bf16 %v2452_v15, %v2448_v12  ;;  %v2462_v57 = vpack.c.bf16 %v2454_v53, %v2450_v34 }
 0x9ea   : > { %v2461_v14 = vpack.c.bf16 %v2453_v23, %v2449_v21  ;;  %v2463_v35 = vpack.c.bf16 %v2455_v56, %v2451_v47 }
 0x9ec   : > { %2767 = vmatprep.mubr.bf16.mxu0 %v2461_v14  ;;  %2816 = vmatprep.mubr.bf16.mxu1 %v2463_v35 }
 0x9ed   : > { %2768 = vmatmul.mubr.bf16.gmra.mrb[56].mxu0 %v2460_v27  ;;  %2817 = vmatmul.mubr.bf16.gmra.mrb[48].mxu1 %v2462_v57 }
 0xab8   : > { %v3168_v17 = vpop.f32.mrb[52].mxu0  ;;  %v3196_v62 = vpop.f32.mrb[44].mxu1 }
 0xab9   : > { %v3169_v37 = vpop.f32.mrb[53].mxu0  ;;  %v3197_v3 = vpop.f32.mrb[45].mxu1 }
 0xaba   : > { %v3170_v2 = vadd.f32 %v3169_v37, %v3168_v17  ;;  %v3198_v4 = vadd.f32 %v3197_v3, %v3196_v62  ;;  %v3171_v7 = vpop.f32.mrb[54].mxu0  ;;  %v3199_v8 = vpop.f32.mrb[46].mxu1 }
 0xabb   : > { %v3172_v46 = vpop.f32.mrb[55].mxu0  ;;  %v3200_v10 = vpop.f32.mrb[47].mxu1 }
 0xabc   : > { %v2762_v51 = vadd.f32 %v3170_v2, %v3060_v1  ;;  %v3173_v55 = vadd.f32 %v3172_v46, %v3171_v7  ;;  %v3201_v18 = vadd.f32 %v3200_v10, %v3199_v8 }
 0xabe   : > { %v2811_v19 = vadd.f32 %v3198_v4, %v2762_v51  ;;  %v2765_v25 = vadd.f32 %v3173_v55, %v3060_v1 }
 0xac0   : > { %v2825_v61 = vadd.f32 %v2811_v19, %v4503_v26  ;;  %v2814_v58 = vadd.f32 %v3201_v18, %v2765_v25  ;;  %v3174_v0 = vpop.f32.mrb[56].mxu0  ;;  %v3202_v54 = vpop.f32.mrb[48].mxu1 }
 0xac1   : > { %v3175_v30 = vpop.f32.mrb[57].mxu0  ;;  %v3203_v13 = vpop.f32.mrb[49].mxu1 }
 0xac2   : > { %2829 = vst [vmem:[%s489_s18] sm:$0xff] %v2825_v61  ;;  %v2826_v5 = vadd.f32 %v2814_v58, %v4506_v60  ;;  %v3176_v31 = vadd.f32 %v3175_v30, %v3174_v0  ;;  %v3204_v48 = vadd.f32 %v3203_v13, %v3202_v54  ;;  %v3177_v33 = vpop.f32.mrb[58].mxu0  ;;  %v3205_v9 = vpop.f32.mrb[50].mxu1 }
 0xac3   : > { %v3178_v22 = vpop.f32.mrb[59].mxu0  ;;  %v3206_v6 = vpop.f32.mrb[51].mxu1 }
 0xac4   : > { %2830 = vst [vmem:[%s489_s18 + $0x8] sm:$0xff] %v2826_v5  ;;  %v2770_v26 = vadd.f32 %v3176_v31, %v3060_v1  ;;  %v3179_v29 = vadd.f32 %v3178_v22, %v3177_v33  ;;  %v3207_v59 = vadd.f32 %v3206_v6, %v3205_v9 }
 0xac6   : > { %v2819_v24 = vadd.f32 %v3204_v48, %v2770_v26  ;;  %v2773_v38 = vadd.f32 %v3179_v29, %v3060_v1 }
 0xac8   : > { %v2827_v60 = vadd.f32 %v2819_v24, %v4509_v11  ;;  %v2822_v41 = vadd.f32 %v3207_v59, %v2773_v38 }
 0xaca   : > { %2831 = vst [vmem:[%s489_s18 + $0x10] sm:$0xff] %v2827_v60  ;;  %v2828_v63 = vadd.f32 %v2822_v41, %v4514_v52 }
 0xacc   : > { %2832 = vst [vmem:[%s489_s18 + $0x18] sm:$0xff] %v2828_v63 }
 0xacd   : > { %3803 = shalt.err (!%p3800_p12)
}
 0xace   : > { %s3804_s16 = scalar_lea.hbm %s4570_s9, 512  ;;  %s3808_s18 = scalar_lea.hbm %s4656_s14, 2048 }
 0xacf   : > { %p3805_p0 = scmp.ne.s32.totalorder %s4570_s9, %s3804_s16  ;;  %p3809_p11 = scmp.lt.u32.totalorder %s4570_s9, %s4656_s14 }
 0xad0   : > { %p3810_p1 = scmp.lt.u32.totalorder %s3808_s18, %s3804_s16  ;;  %p3812_p6 = scmp.lt.u32.totalorder %s3804_s16, %s4570_s9 }
 0xad1   : > { %p3806_p5 = pnand %p3805_p0, %p4102_p4 }
 0xad2   : > { %p3811_p2 = por %p3810_p1, %p3809_p11 }
 0xad3   : > { %p3807_p10 = pneg %p3806_p5 }
 0xad4   : > { %p3813_p8 = por %p3812_p6, %p3811_p2 }
 0xad6   : > { %p3814_p13 = pnand %p3813_p8, %p3807_p10 }
 0xad8   : > { %3817 = shalt.err (!%p3814_p13)
}
 0xad9   : > { %s3887_s12 = smov 128   ;;  %s3888_s27 = smov 8  }
 0xada   : > { %3362 = dma.vmem_to_hbm [thread:$0]  (%p4102_p4), %s4564_s13, 512, %s4570_s9, %s2834_s26, %s3887_s12, %s3887_s12, %s3888_s27  }
 0xadb PF: > { %s4657_s25 = sld [smem:[#allocation18_spill]]  ;;  %s4658_s29 = sld [smem:[#allocation19_spill]] }
 0xadc   : > { %p3394_p3 = scmp.ge.s32.totalorder %s3864_s24, 2 }
 0xae1   : > { %s2862_s17 = sand.u32 1, %s4657_s25   ;;  %p4659_p7 = scmp.ne.s32.totalorder %s4658_s29, 0 }
 0xae2   : > { %s2863_s16 = scalar_lea.sflag [#allocation6], %s2862_s17 }
 0xae3   : > { %p3382_p9 = pnand %p3394_p3, %p4659_p7 }
 0xae5   : > { %3847 = dma.done.wait (!%p3382_p9), %s2863_s16, 512  }
 0xae6   : > { %3849 = vsyncadd (!%p3382_p9), %s2863_s16, 4294966784  ;;  %p27_p12 = scmp.ge.s32.totalorder %s4092_s30, 6   ;;  %s4660_s21 = smov %s3856_s22 }
 0xae7   : > { %s4661_s22 = smov %s3860_s23  ;;  %s4662_s23 = smov %s4108_s19 }
 0xae8   : > { %s4663_s24 = smov %s4092_s30  ;;  %29 = sbr.rel (!%p27_p12) target bundleno = 12 (0xc), region = 129 }
 0xaef   :  { %2868 = vsyncpa [#allocation5], 1 }
 0xaf0   :  { %2870 = vsyncpa [#allocation5 + $0x1], 1 }
 0xaf1   :  { %2871 = vsyncpa [#allocation8], 1 }
 0xaf2   :  { %2872 = vsyncpa [#allocation11], 1 }
 0xaf3   :  { %2873 = vsyncpa [#allocation6], 1 }
 0xaf4   :  { %2875 = vsyncpa [#allocation6 + $0x1], 1 }

</bundles_post_ra>
